<compile_context>
chip_gen: v5e
topology: v5e:2x2
jax: 0.10.0
libtpu: 0.0.40
codegen_flags: <defaults>
</compile_context>

<pallas_src>
import functools

import jax
import jax.numpy as jnp
from jax.experimental import pallas as pl
from jax.experimental.pallas import tpu as pltpu


CFG = dict(
    vocab_size=100,
    max_pos=16,
    type_vocab=2,
    hidden=32,          # embed_size
    heads=4,
    intermediate=64,
    layers=2,
)

LN_EPS = 1e-12


# ------------------------------ fused kernel -------------------------------

def _layernorm(h, g, b, eps):
    mean = jnp.mean(h, axis=-1, keepdims=True)
    cen = h - mean
    var = jnp.mean(cen * cen, axis=-1, keepdims=True)
    return cen * jax.lax.rsqrt(var + eps) * g + b


def _gelu_exact(x):
    # exact (erf-based) GELU, as in HF BertModel hidden_act="gelu"
    return 0.5 * x * (1.0 + jax.lax.erf(x * jnp.float32(0.7071067811865476)))


def _bert_fused_kernel(
    x_ref,              # (1, S, H) summed embeddings (one batch elem)
    gvec_ref,           # (8, H)  rows: emb_ln_g, emb_ln_b, mlp_b1, mlp_b2, pad
    wqkv_ref,           # (L, H, 3H)
    wo_ref,             # (L, H, H)
    wi_ref,             # (L, H, I)
    wf_ref,             # (L, I, H)
    lvec_ref,           # (L, 8, 3H) rows: bqkv, bo, ln1_g, ln1_b, bi, bf, ln2_g, ln2_b
    mw1_ref, mw2_ref,   # (H, H) each
    o_ref,              # (1, S, H)
    *, heads, eps):
    S = x_ref.shape[1]
    H = x_ref.shape[2]
    L = wqkv_ref.shape[0]
    I = wi_ref.shape[-1]
    dh = H // heads
    scale = jnp.float32(1.0 / float(dh) ** 0.5)

    gv = gvec_ref[...]                                  # (8, H)

    # Embedding LayerNorm (no residual; dropout = identity in eval mode).
    x = _layernorm(x_ref[0].astype(jnp.float32), gv[0:1, :], gv[1:2, :], eps)

    for l in range(L):
        lv = lvec_ref[l]                                # (8, 3H)
        bqkv = lv[0:1, :]                               # (1, 3H)
        bo, ln1g, ln1b = lv[1:2, :H], lv[2:3, :H], lv[3:4, :H]
        bi = lv[4:5, :I]
        bf, ln2g, ln2b = lv[5:6, :H], lv[6:7, :H], lv[7:8, :H]

        # ---- fused Q/K/V projection: one (S,H) @ (H,3H) matmul ----
        qkv = jnp.dot(x, wqkv_ref[l], preferred_element_type=jnp.float32) + bqkv

        # ---- multi-head attention, all heads in this grid step.
        # Per-head context is projected through the matching rows of W_o and
        # accumulated, so no head-concat / merge-transpose is needed.
        wo_l = wo_ref[l]                                # (H, H)
        attn = jnp.zeros((S, H), jnp.float32)
        for h in range(heads):
            qh = qkv[:, 0 * H + h * dh: 0 * H + (h + 1) * dh]   # (S, dh)
            kh = qkv[:, 1 * H + h * dh: 1 * H + (h + 1) * dh]
            vh = qkv[:, 2 * H + h * dh: 2 * H + (h + 1) * dh]
            s = jax.lax.dot_general(                    # q @ k^T (no explicit transpose)
                qh, kh, (((1,), (1,)), ((), ())),
                preferred_element_type=jnp.float32) * scale     # (S, S)
            m = jnp.max(s, axis=-1, keepdims=True)
            p = jnp.exp(s - m)
            inv = pl.reciprocal(jnp.sum(p, axis=-1, keepdims=True), approx=True)
            ctx = jnp.dot(p, vh, preferred_element_type=jnp.float32) * inv   # (S, dh)
            attn = attn + jnp.dot(ctx, wo_l[h * dh:(h + 1) * dh, :],
                                  preferred_element_type=jnp.float32)
        attn = attn + bo

        # ---- residual + LayerNorm 1 (fused epilogue) ----
        x = _layernorm(attn + x, ln1g, ln1b, eps)

        # ---- FFN: GELU(x @ Wi + bi) @ Wf + bf, then residual + LayerNorm 2 ----
        ffh = _gelu_exact(
            jnp.dot(x, wi_ref[l], preferred_element_type=jnp.float32) + bi)
        ff = jnp.dot(ffh, wf_ref[l], preferred_element_type=jnp.float32) + bf
        x = _layernorm(ff + x, ln2g, ln2b, eps)

    # ---- MLP head: Linear -> ReLU -> Linear -> ReLU ----
    y = jnp.maximum(
        jnp.dot(x, mw1_ref[...], preferred_element_type=jnp.float32) + gv[2:3, :], 0.0)
    y = jnp.maximum(
        jnp.dot(y, mw2_ref[...], preferred_element_type=jnp.float32) + gv[3:4, :], 0.0)
    o_ref[0] = y.astype(o_ref.dtype)


# ------------------------- parameter initialization ------------------------

def _normal(key, shape, std=0.02):
    return std * jax.random.normal(key, shape, dtype=jnp.float32)


def init_params(key):
    H, I = CFG["hidden"], CFG["intermediate"]
    keys = iter(jax.random.split(key, 256))
    p = {
        "word_emb": _normal(next(keys), (CFG["vocab_size"], H)),
        "pos_emb": _normal(next(keys), (CFG["max_pos"], H)),
        "type_emb": _normal(next(keys), (CFG["type_vocab"], H)),
        "emb_ln_g": jnp.ones((H,), jnp.float32),
        "emb_ln_b": jnp.zeros((H,), jnp.float32),
        "layers": [],
        # MLP head: Linear(H,H) -> ReLU -> Linear(H,H) -> ReLU
        "mlp_w1": _normal(next(keys), (H, H)),
        "mlp_b1": jnp.zeros((H,), jnp.float32),
        "mlp_w2": _normal(next(keys), (H, H)),
        "mlp_b2": jnp.zeros((H,), jnp.float32),
    }
    for _ in range(CFG["layers"]):
        layer = {
            "wq": _normal(next(keys), (H, H)), "bq": jnp.zeros((H,), jnp.float32),
            "wk": _normal(next(keys), (H, H)), "bk": jnp.zeros((H,), jnp.float32),
            "wv": _normal(next(keys), (H, H)), "bv": jnp.zeros((H,), jnp.float32),
            "wo": _normal(next(keys), (H, H)), "bo": jnp.zeros((H,), jnp.float32),
            "ln1_g": jnp.ones((H,), jnp.float32), "ln1_b": jnp.zeros((H,), jnp.float32),
            "wi": _normal(next(keys), (H, I)), "bi": jnp.zeros((I,), jnp.float32),
            "wf": _normal(next(keys), (I, H)), "bf": jnp.zeros((H,), jnp.float32),
            "ln2_g": jnp.ones((H,), jnp.float32), "ln2_b": jnp.zeros((H,), jnp.float32),
        }
        p["layers"].append(layer)
    return p


# ------------------------------ forward pass -------------------------------

def bert_base_forward(params, input_ids):
    """Equivalent of BertBase.forward: mlp(bert(input).last_hidden_state)."""
    B, S = input_ids.shape
    H, I = CFG["hidden"], CFG["intermediate"]
    L, heads = CFG["layers"], CFG["heads"]
    assert 3 * H >= I, "lvec packing requires intermediate <= 3 * hidden"

    # Embedding gather + sum (glue, plain JAX); token_type_ids = 0.
    emb = (params["word_emb"][input_ids]
           + params["pos_emb"][:S][None, :, :]
           + params["type_emb"][0][None, None, :]).astype(jnp.float32)   # (B, S, H)

    lyrs = params["layers"]
    # Stack per-layer weight matrices along a leading L axis; fuse Q|K|V.
    wqkv = jnp.stack(
        [jnp.concatenate([l["wq"], l["wk"], l["wv"]], axis=1) for l in lyrs])  # (L,H,3H)
    wo = jnp.stack([l["wo"] for l in lyrs])                                    # (L,H,H)
    wi = jnp.stack([l["wi"] for l in lyrs])                                    # (L,H,I)
    wf = jnp.stack([l["wf"] for l in lyrs])                                    # (L,I,H)

    # Pack all per-layer small row-vectors into one (L, 8, 3H) operand
    # (one sublane row per vector, zero-padded to 3H lanes).
    W = 3 * H

    def pad_row(v):
        return jnp.pad(v, (0, W - v.shape[0]))

    lvec = jnp.stack([
        jnp.stack([
            jnp.concatenate([l["bq"], l["bk"], l["bv"]]),   # (3H,)
            pad_row(l["bo"]),
            pad_row(l["ln1_g"]), pad_row(l["ln1_b"]),
            pad_row(l["bi"]),
            pad_row(l["bf"]),
            pad_row(l["ln2_g"]), pad_row(l["ln2_b"]),
        ]) for l in lyrs
    ])                                                      # (L, 8, 3H)

    # Global small vectors packed into one (8, H) operand.
    gvec = jnp.stack(
        [params["emb_ln_g"], params["emb_ln_b"],
         params["mlp_b1"], params["mlp_b2"]]
        + [jnp.zeros((H,), jnp.float32)] * 4)               # (8, H)

    mw1, mw2 = params["mlp_w1"], params["mlp_w2"]

    kernel = functools.partial(_bert_fused_kernel, heads=heads, eps=LN_EPS)

    weights = (gvec, wqkv, wo, wi, wf, lvec, mw1, mw2)

    def wspec(a):
        # Full-array (weight) block; constant index -> stays VMEM-resident.
        if a.ndim == 2:
            return pl.BlockSpec(a.shape, lambda b: (0, 0))
        return pl.BlockSpec(a.shape, lambda b: (0, 0, 0))

    in_specs = [pl.BlockSpec((1, S, H), lambda b: (b, 0, 0))] + \
               [wspec(a) for a in weights]

    # Advisory cost estimate (helps XLA schedule the custom call).
    flops = B * (
        L * (2 * S * H * (3 * H)        # fused QKV projection
             + 4 * S * S * H            # scores + context over all heads
             + 2 * S * H * H            # output projection
             + 4 * S * H * I)           # FFN up + down
        + 4 * S * H * H)                # MLP head
    transcendentals = B * L * (heads * S * S + S * I)
    bytes_accessed = (int(emb.size) + sum(int(a.size) for a in weights)
                      + B * S * H) * 4
    cost = pl.CostEstimate(flops=int(flops),
                           transcendentals=int(transcendentals),
                           bytes_accessed=int(bytes_accessed))

    out = pl.pallas_call(
        kernel,
        out_shape=jax.ShapeDtypeStruct((B, S, H), jnp.float32),
        grid=(B,),
        in_specs=in_specs,
        out_specs=pl.BlockSpec((1, S, H), lambda b: (b, 0, 0)),
        compiler_params=pltpu.CompilerParams(dimension_semantics=("parallel",)),
        cost_estimate=cost,
    )(emb, *weights)
    return out


# ---------------------------------- main ------------------------------------

if __name__ == "__main__":
    key = jax.random.PRNGKey(0)
    pkey, ikey = jax.random.split(key)

    params = init_params(pkey)
    batch, seq = 2, 8
    input_ids = jax.random.randint(ikey, (batch, seq), 0, CFG["vocab_size"],
                                   dtype=jnp.int32)

    forward = jax.jit(bert_base_forward)
    out = forward(params, input_ids)
    out = jax.block_until_ready(out)

    assert out.shape == (batch, seq, CFG["hidden"]), out.shape
    assert jnp.isfinite(out).all()
    print("KERNEL_OK")
</pallas_src>

<mosaic_0001>
module attributes {stable_mosaic.version = 11 : i64} {
  func.func @_bert_fused_kernel(%arg0: i32, %arg1: memref<1x8x32xf32, #tpu.memory_space<vmem>>, %arg2: memref<8x32xf32, #tpu.memory_space<vmem>>, %arg3: memref<2x32x96xf32, #tpu.memory_space<vmem>>, %arg4: memref<2x32x32xf32, #tpu.memory_space<vmem>>, %arg5: memref<2x32x64xf32, #tpu.memory_space<vmem>>, %arg6: memref<2x64x32xf32, #tpu.memory_space<vmem>>, %arg7: memref<2x8x96xf32, #tpu.memory_space<vmem>>, %arg8: memref<32x32xf32, #tpu.memory_space<vmem>>, %arg9: memref<32x32xf32, #tpu.memory_space<vmem>>, %arg10: memref<1x8x32xf32, #tpu.memory_space<vmem>>) attributes {dimension_semantics = [#tpu.dimension_semantics<parallel>], iteration_bounds = array<i64: 2>, scalar_prefetch = 0 : i64, scratch_operands = 0 : i64, tpu.core_type = #tpu.core_type<tc>, window_params = [{transform_indices = @transform_0, window_bounds = array<i64: 1, 8, 32>}, {pipeline_mode = #tpu.pipeline_mode<synchronous>, transform_indices = @transform_1, window_bounds = array<i64: 8, 32>}, {pipeline_mode = #tpu.pipeline_mode<synchronous>, transform_indices = @transform_2, window_bounds = array<i64: 2, 32, 96>}, {pipeline_mode = #tpu.pipeline_mode<synchronous>, transform_indices = @transform_3, window_bounds = array<i64: 2, 32, 32>}, {pipeline_mode = #tpu.pipeline_mode<synchronous>, transform_indices = @transform_4, window_bounds = array<i64: 2, 32, 64>}, {pipeline_mode = #tpu.pipeline_mode<synchronous>, transform_indices = @transform_5, window_bounds = array<i64: 2, 64, 32>}, {pipeline_mode = #tpu.pipeline_mode<synchronous>, transform_indices = @transform_6, window_bounds = array<i64: 2, 8, 96>}, {pipeline_mode = #tpu.pipeline_mode<synchronous>, transform_indices = @transform_7, window_bounds = array<i64: 32, 32>}, {pipeline_mode = #tpu.pipeline_mode<synchronous>, transform_indices = @transform_8, window_bounds = array<i64: 32, 32>}, {transform_indices = @transform_9, window_bounds = array<i64: 1, 8, 32>}]} {
    %c0 = arith.constant 0 : index
    %c0_0 = arith.constant 0 : index
    %0 = vector.load %arg2[%c0, %c0_0] : memref<8x32xf32, #tpu.memory_space<vmem>>, vector<8x32xf32>
    %c0_1 = arith.constant 0 : index
    %c0_2 = arith.constant 0 : index
    %c0_3 = arith.constant 0 : index
    %1 = vector.load %arg1[%c0_1, %c0_2, %c0_3] : memref<1x8x32xf32, #tpu.memory_space<vmem>>, vector<1x8x32xf32>
    %2 = vector.shape_cast %1 : vector<1x8x32xf32> to vector<8x32xf32>
    %3 = vector.extract_strided_slice %0 {offsets = [0, 0], sizes = [1, 32], strides = [1, 1]} : vector<8x32xf32> to vector<1x32xf32>
    %4 = vector.extract_strided_slice %0 {offsets = [1, 0], sizes = [1, 32], strides = [1, 1]} : vector<8x32xf32> to vector<1x32xf32>
    %cst = arith.constant dense<0.000000e+00> : vector<8xf32>
    %5 = vector.multi_reduction <add>, %2, %cst [1] : vector<8x32xf32> to vector<8xf32>
    %6 = vector.shape_cast %5 : vector<8xf32> to vector<8x1xf32>
    %cst_4 = arith.constant 3.200000e+01 : f32
    %7 = vector.broadcast %cst_4 : f32 to vector<8x1xf32>
    %8 = arith.divf %6, %7 : vector<8x1xf32>
    %9 = vector.broadcast %8 : vector<8x1xf32> to vector<8x32xf32>
    %10 = arith.subf %2, %9 : vector<8x32xf32>
    %11 = arith.mulf %10, %10 : vector<8x32xf32>
    %cst_5 = arith.constant dense<0.000000e+00> : vector<8xf32>
    %12 = vector.multi_reduction <add>, %11, %cst_5 [1] : vector<8x32xf32> to vector<8xf32>
    %13 = vector.shape_cast %12 : vector<8xf32> to vector<8x1xf32>
    %cst_6 = arith.constant 3.200000e+01 : f32
    %14 = vector.broadcast %cst_6 : f32 to vector<8x1xf32>
    %15 = arith.divf %13, %14 : vector<8x1xf32>
    %cst_7 = arith.constant 9.99999996E-13 : f32
    %16 = vector.broadcast %cst_7 : f32 to vector<8x1xf32>
    %17 = arith.addf %15, %16 : vector<8x1xf32>
    %18 = math.rsqrt %17 : vector<8x1xf32>
    %19 = vector.broadcast %18 : vector<8x1xf32> to vector<8x32xf32>
    %20 = arith.mulf %10, %19 : vector<8x32xf32>
    %21 = vector.broadcast %3 : vector<1x32xf32> to vector<8x32xf32>
    %22 = arith.mulf %20, %21 : vector<8x32xf32>
    %23 = vector.broadcast %4 : vector<1x32xf32> to vector<8x32xf32>
    %24 = arith.addf %22, %23 : vector<8x32xf32>
    %c0_8 = arith.constant 0 : index
    %c0_9 = arith.constant 0 : index
    %c0_10 = arith.constant 0 : index
    %25 = vector.load %arg7[%c0_8, %c0_9, %c0_10] : memref<2x8x96xf32, #tpu.memory_space<vmem>>, vector<1x8x96xf32>
    %26 = vector.shape_cast %25 : vector<1x8x96xf32> to vector<8x96xf32>
    %27 = vector.extract_strided_slice %26 {offsets = [0, 0], sizes = [1, 96], strides = [1, 1]} : vector<8x96xf32> to vector<1x96xf32>
    %28 = vector.extract_strided_slice %26 {offsets = [1, 0], sizes = [1, 32], strides = [1, 1]} : vector<8x96xf32> to vector<1x32xf32>
    %29 = vector.extract_strided_slice %26 {offsets = [2, 0], sizes = [1, 32], strides = [1, 1]} : vector<8x96xf32> to vector<1x32xf32>
    %30 = vector.extract_strided_slice %26 {offsets = [3, 0], sizes = [1, 32], strides = [1, 1]} : vector<8x96xf32> to vector<1x32xf32>
    %31 = vector.extract_strided_slice %26 {offsets = [4, 0], sizes = [1, 64], strides = [1, 1]} : vector<8x96xf32> to vector<1x64xf32>
    %32 = vector.extract_strided_slice %26 {offsets = [5, 0], sizes = [1, 32], strides = [1, 1]} : vector<8x96xf32> to vector<1x32xf32>
    %33 = vector.extract_strided_slice %26 {offsets = [6, 0], sizes = [1, 32], strides = [1, 1]} : vector<8x96xf32> to vector<1x32xf32>
    %34 = vector.extract_strided_slice %26 {offsets = [7, 0], sizes = [1, 32], strides = [1, 1]} : vector<8x96xf32> to vector<1x32xf32>
    %c0_11 = arith.constant 0 : index
    %c0_12 = arith.constant 0 : index
    %c0_13 = arith.constant 0 : index
    %35 = vector.load %arg3[%c0_11, %c0_12, %c0_13] : memref<2x32x96xf32, #tpu.memory_space<vmem>>, vector<1x32x96xf32>
    %36 = vector.shape_cast %35 : vector<1x32x96xf32> to vector<32x96xf32>
    %cst_14 = arith.constant dense<0.000000e+00> : vector<8x96xf32>
    %37 = tpu.matmul %24, %36, %cst_14 {dimension_numbers = #tpu.dot_dimension_numbers<[1], [0], [0], [1], [0, 0, 1, 1], [], []>} : vector<8x32xf32>, vector<32x96xf32>, vector<8x96xf32> -> vector<8x96xf32>
    %38 = vector.broadcast %27 : vector<1x96xf32> to vector<8x96xf32>
    %39 = arith.addf %37, %38 : vector<8x96xf32>
    %c0_15 = arith.constant 0 : index
    %c0_16 = arith.constant 0 : index
    %c0_17 = arith.constant 0 : index
    %40 = vector.load %arg4[%c0_15, %c0_16, %c0_17] : memref<2x32x32xf32, #tpu.memory_space<vmem>>, vector<1x32x32xf32>
    %41 = vector.shape_cast %40 : vector<1x32x32xf32> to vector<32x32xf32>
    %cst_18 = arith.constant 0.000000e+00 : f32
    %42 = vector.broadcast %cst_18 : f32 to vector<8x32xf32>
    %43 = vector.extract_strided_slice %39 {offsets = [0, 0], sizes = [8, 8], strides = [1, 1]} : vector<8x96xf32> to vector<8x8xf32>
    %44 = vector.extract_strided_slice %39 {offsets = [0, 32], sizes = [8, 8], strides = [1, 1]} : vector<8x96xf32> to vector<8x8xf32>
    %45 = vector.extract_strided_slice %39 {offsets = [0, 64], sizes = [8, 8], strides = [1, 1]} : vector<8x96xf32> to vector<8x8xf32>
    %cst_19 = arith.constant dense<0.000000e+00> : vector<8x8xf32>
    %46 = tpu.matmul %43, %44, %cst_19 {dimension_numbers = #tpu.dot_dimension_numbers<[1], [1], [0], [0], [0, 0, 1, 0], [], []>} : vector<8x8xf32>, vector<8x8xf32>, vector<8x8xf32> -> vector<8x8xf32>
    %cst_20 = arith.constant 0.353553385 : f32
    %47 = vector.broadcast %cst_20 : f32 to vector<8x8xf32>
    %48 = arith.mulf %46, %47 : vector<8x8xf32>
    %cst_21 = arith.constant dense<0xFF800000> : vector<8xf32>
    %49 = vector.multi_reduction <maximumf>, %48, %cst_21 [1] : vector<8x8xf32> to vector<8xf32>
    %50 = vector.shape_cast %49 : vector<8xf32> to vector<8x1xf32>
    %51 = vector.broadcast %50 : vector<8x1xf32> to vector<8x8xf32>
    %52 = arith.subf %48, %51 : vector<8x8xf32>
    %53 = math.exp %52 : vector<8x8xf32>
    %cst_22 = arith.constant dense<0.000000e+00> : vector<8xf32>
    %54 = vector.multi_reduction <add>, %53, %cst_22 [1] : vector<8x8xf32> to vector<8xf32>
    %55 = vector.shape_cast %54 : vector<8xf32> to vector<8x1xf32>
    %56 = tpu.reciprocal %55 {approx = true} : vector<8x1xf32> -> vector<8x1xf32>
    %cst_23 = arith.constant dense<0.000000e+00> : vector<8x8xf32>
    %57 = tpu.matmul %53, %45, %cst_23 {dimension_numbers = #tpu.dot_dimension_numbers<[1], [0], [0], [1], [0, 0, 1, 1], [], []>} : vector<8x8xf32>, vector<8x8xf32>, vector<8x8xf32> -> vector<8x8xf32>
    %58 = vector.broadcast %56 : vector<8x1xf32> to vector<8x8xf32>
    %59 = arith.mulf %57, %58 : vector<8x8xf32>
    %60 = vector.extract_strided_slice %41 {offsets = [0, 0], sizes = [8, 32], strides = [1, 1]} : vector<32x32xf32> to vector<8x32xf32>
    %cst_24 = arith.constant dense<0.000000e+00> : vector<8x32xf32>
    %61 = tpu.matmul %59, %60, %cst_24 {dimension_numbers = #tpu.dot_dimension_numbers<[1], [0], [0], [1], [0, 0, 1, 1], [], []>} : vector<8x8xf32>, vector<8x32xf32>, vector<8x32xf32> -> vector<8x32xf32>
    %62 = arith.addf %42, %61 : vector<8x32xf32>
    %63 = vector.extract_strided_slice %39 {offsets = [0, 8], sizes = [8, 8], strides = [1, 1]} : vector<8x96xf32> to vector<8x8xf32>
    %64 = vector.extract_strided_slice %39 {offsets = [0, 40], sizes = [8, 8], strides = [1, 1]} : vector<8x96xf32> to vector<8x8xf32>
    %65 = vector.extract_strided_slice %39 {offsets = [0, 72], sizes = [8, 8], strides = [1, 1]} : vector<8x96xf32> to vector<8x8xf32>
    %cst_25 = arith.constant dense<0.000000e+00> : vector<8x8xf32>
    %66 = tpu.matmul %63, %64, %cst_25 {dimension_numbers = #tpu.dot_dimension_numbers<[1], [1], [0], [0], [0, 0, 1, 0], [], []>} : vector<8x8xf32>, vector<8x8xf32>, vector<8x8xf32> -> vector<8x8xf32>
    %cst_26 = arith.constant 0.353553385 : f32
    %67 = vector.broadcast %cst_26 : f32 to vector<8x8xf32>
    %68 = arith.mulf %66, %67 : vector<8x8xf32>
    %cst_27 = arith.constant dense<0xFF800000> : vector<8xf32>
    %69 = vector.multi_reduction <maximumf>, %68, %cst_27 [1] : vector<8x8xf32> to vector<8xf32>
    %70 = vector.shape_cast %69 : vector<8xf32> to vector<8x1xf32>
    %71 = vector.broadcast %70 : vector<8x1xf32> to vector<8x8xf32>
    %72 = arith.subf %68, %71 : vector<8x8xf32>
    %73 = math.exp %72 : vector<8x8xf32>
    %cst_28 = arith.constant dense<0.000000e+00> : vector<8xf32>
    %74 = vector.multi_reduction <add>, %73, %cst_28 [1] : vector<8x8xf32> to vector<8xf32>
    %75 = vector.shape_cast %74 : vector<8xf32> to vector<8x1xf32>
    %76 = tpu.reciprocal %75 {approx = true} : vector<8x1xf32> -> vector<8x1xf32>
    %cst_29 = arith.constant dense<0.000000e+00> : vector<8x8xf32>
    %77 = tpu.matmul %73, %65, %cst_29 {dimension_numbers = #tpu.dot_dimension_numbers<[1], [0], [0], [1], [0, 0, 1, 1], [], []>} : vector<8x8xf32>, vector<8x8xf32>, vector<8x8xf32> -> vector<8x8xf32>
    %78 = vector.broadcast %76 : vector<8x1xf32> to vector<8x8xf32>
    %79 = arith.mulf %77, %78 : vector<8x8xf32>
    %80 = vector.extract_strided_slice %41 {offsets = [8, 0], sizes = [8, 32], strides = [1, 1]} : vector<32x32xf32> to vector<8x32xf32>
    %cst_30 = arith.constant dense<0.000000e+00> : vector<8x32xf32>
    %81 = tpu.matmul %79, %80, %cst_30 {dimension_numbers = #tpu.dot_dimension_numbers<[1], [0], [0], [1], [0, 0, 1, 1], [], []>} : vector<8x8xf32>, vector<8x32xf32>, vector<8x32xf32> -> vector<8x32xf32>
    %82 = arith.addf %62, %81 : vector<8x32xf32>
    %83 = vector.extract_strided_slice %39 {offsets = [0, 16], sizes = [8, 8], strides = [1, 1]} : vector<8x96xf32> to vector<8x8xf32>
    %84 = vector.extract_strided_slice %39 {offsets = [0, 48], sizes = [8, 8], strides = [1, 1]} : vector<8x96xf32> to vector<8x8xf32>
    %85 = vector.extract_strided_slice %39 {offsets = [0, 80], sizes = [8, 8], strides = [1, 1]} : vector<8x96xf32> to vector<8x8xf32>
    %cst_31 = arith.constant dense<0.000000e+00> : vector<8x8xf32>
    %86 = tpu.matmul %83, %84, %cst_31 {dimension_numbers = #tpu.dot_dimension_numbers<[1], [1], [0], [0], [0, 0, 1, 0], [], []>} : vector<8x8xf32>, vector<8x8xf32>, vector<8x8xf32> -> vector<8x8xf32>
    %cst_32 = arith.constant 0.353553385 : f32
    %87 = vector.broadcast %cst_32 : f32 to vector<8x8xf32>
    %88 = arith.mulf %86, %87 : vector<8x8xf32>
    %cst_33 = arith.constant dense<0xFF800000> : vector<8xf32>
    %89 = vector.multi_reduction <maximumf>, %88, %cst_33 [1] : vector<8x8xf32> to vector<8xf32>
    %90 = vector.shape_cast %89 : vector<8xf32> to vector<8x1xf32>
    %91 = vector.broadcast %90 : vector<8x1xf32> to vector<8x8xf32>
    %92 = arith.subf %88, %91 : vector<8x8xf32>
    %93 = math.exp %92 : vector<8x8xf32>
    %cst_34 = arith.constant dense<0.000000e+00> : vector<8xf32>
    %94 = vector.multi_reduction <add>, %93, %cst_34 [1] : vector<8x8xf32> to vector<8xf32>
    %95 = vector.shape_cast %94 : vector<8xf32> to vector<8x1xf32>
    %96 = tpu.reciprocal %95 {approx = true} : vector<8x1xf32> -> vector<8x1xf32>
    %cst_35 = arith.constant dense<0.000000e+00> : vector<8x8xf32>
    %97 = tpu.matmul %93, %85, %cst_35 {dimension_numbers = #tpu.dot_dimension_numbers<[1], [0], [0], [1], [0, 0, 1, 1], [], []>} : vector<8x8xf32>, vector<8x8xf32>, vector<8x8xf32> -> vector<8x8xf32>
    %98 = vector.broadcast %96 : vector<8x1xf32> to vector<8x8xf32>
    %99 = arith.mulf %97, %98 : vector<8x8xf32>
    %100 = vector.extract_strided_slice %41 {offsets = [16, 0], sizes = [8, 32], strides = [1, 1]} : vector<32x32xf32> to vector<8x32xf32>
    %cst_36 = arith.constant dense<0.000000e+00> : vector<8x32xf32>
    %101 = tpu.matmul %99, %100, %cst_36 {dimension_numbers = #tpu.dot_dimension_numbers<[1], [0], [0], [1], [0, 0, 1, 1], [], []>} : vector<8x8xf32>, vector<8x32xf32>, vector<8x32xf32> -> vector<8x32xf32>
    %102 = arith.addf %82, %101 : vector<8x32xf32>
    %103 = vector.extract_strided_slice %39 {offsets = [0, 24], sizes = [8, 8], strides = [1, 1]} : vector<8x96xf32> to vector<8x8xf32>
    %104 = vector.extract_strided_slice %39 {offsets = [0, 56], sizes = [8, 8], strides = [1, 1]} : vector<8x96xf32> to vector<8x8xf32>
    %105 = vector.extract_strided_slice %39 {offsets = [0, 88], sizes = [8, 8], strides = [1, 1]} : vector<8x96xf32> to vector<8x8xf32>
    %cst_37 = arith.constant dense<0.000000e+00> : vector<8x8xf32>
    %106 = tpu.matmul %103, %104, %cst_37 {dimension_numbers = #tpu.dot_dimension_numbers<[1], [1], [0], [0], [0, 0, 1, 0], [], []>} : vector<8x8xf32>, vector<8x8xf32>, vector<8x8xf32> -> vector<8x8xf32>
    %cst_38 = arith.constant 0.353553385 : f32
    %107 = vector.broadcast %cst_38 : f32 to vector<8x8xf32>
    %108 = arith.mulf %106, %107 : vector<8x8xf32>
    %cst_39 = arith.constant dense<0xFF800000> : vector<8xf32>
    %109 = vector.multi_reduction <maximumf>, %108, %cst_39 [1] : vector<8x8xf32> to vector<8xf32>
    %110 = vector.shape_cast %109 : vector<8xf32> to vector<8x1xf32>
    %111 = vector.broadcast %110 : vector<8x1xf32> to vector<8x8xf32>
    %112 = arith.subf %108, %111 : vector<8x8xf32>
    %113 = math.exp %112 : vector<8x8xf32>
    %cst_40 = arith.constant dense<0.000000e+00> : vector<8xf32>
    %114 = vector.multi_reduction <add>, %113, %cst_40 [1] : vector<8x8xf32> to vector<8xf32>
    %115 = vector.shape_cast %114 : vector<8xf32> to vector<8x1xf32>
    %116 = tpu.reciprocal %115 {approx = true} : vector<8x1xf32> -> vector<8x1xf32>
    %cst_41 = arith.constant dense<0.000000e+00> : vector<8x8xf32>
    %117 = tpu.matmul %113, %105, %cst_41 {dimension_numbers = #tpu.dot_dimension_numbers<[1], [0], [0], [1], [0, 0, 1, 1], [], []>} : vector<8x8xf32>, vector<8x8xf32>, vector<8x8xf32> -> vector<8x8xf32>
    %118 = vector.broadcast %116 : vector<8x1xf32> to vector<8x8xf32>
    %119 = arith.mulf %117, %118 : vector<8x8xf32>
    %120 = vector.extract_strided_slice %41 {offsets = [24, 0], sizes = [8, 32], strides = [1, 1]} : vector<32x32xf32> to vector<8x32xf32>
    %cst_42 = arith.constant dense<0.000000e+00> : vector<8x32xf32>
    %121 = tpu.matmul %119, %120, %cst_42 {dimension_numbers = #tpu.dot_dimension_numbers<[1], [0], [0], [1], [0, 0, 1, 1], [], []>} : vector<8x8xf32>, vector<8x32xf32>, vector<8x32xf32> -> vector<8x32xf32>
    %122 = arith.addf %102, %121 : vector<8x32xf32>
    %123 = vector.broadcast %28 : vector<1x32xf32> to vector<8x32xf32>
    %124 = arith.addf %122, %123 : vector<8x32xf32>
    %125 = arith.addf %124, %24 : vector<8x32xf32>
    %cst_43 = arith.constant dense<0.000000e+00> : vector<8xf32>
    %126 = vector.multi_reduction <add>, %125, %cst_43 [1] : vector<8x32xf32> to vector<8xf32>
    %127 = vector.shape_cast %126 : vector<8xf32> to vector<8x1xf32>
    %cst_44 = arith.constant 3.200000e+01 : f32
    %128 = vector.broadcast %cst_44 : f32 to vector<8x1xf32>
    %129 = arith.divf %127, %128 : vector<8x1xf32>
    %130 = vector.broadcast %129 : vector<8x1xf32> to vector<8x32xf32>
    %131 = arith.subf %125, %130 : vector<8x32xf32>
    %132 = arith.mulf %131, %131 : vector<8x32xf32>
    %cst_45 = arith.constant dense<0.000000e+00> : vector<8xf32>
    %133 = vector.multi_reduction <add>, %132, %cst_45 [1] : vector<8x32xf32> to vector<8xf32>
    %134 = vector.shape_cast %133 : vector<8xf32> to vector<8x1xf32>
    %cst_46 = arith.constant 3.200000e+01 : f32
    %135 = vector.broadcast %cst_46 : f32 to vector<8x1xf32>
    %136 = arith.divf %134, %135 : vector<8x1xf32>
    %cst_47 = arith.constant 9.99999996E-13 : f32
    %137 = vector.broadcast %cst_47 : f32 to vector<8x1xf32>
    %138 = arith.addf %136, %137 : vector<8x1xf32>
    %139 = math.rsqrt %138 : vector<8x1xf32>
    %140 = vector.broadcast %139 : vector<8x1xf32> to vector<8x32xf32>
    %141 = arith.mulf %131, %140 : vector<8x32xf32>
    %142 = vector.broadcast %29 : vector<1x32xf32> to vector<8x32xf32>
    %143 = arith.mulf %141, %142 : vector<8x32xf32>
    %144 = vector.broadcast %30 : vector<1x32xf32> to vector<8x32xf32>
    %145 = arith.addf %143, %144 : vector<8x32xf32>
    %c0_48 = arith.constant 0 : index
    %c0_49 = arith.constant 0 : index
    %c0_50 = arith.constant 0 : index
    %146 = vector.load %arg5[%c0_48, %c0_49, %c0_50] : memref<2x32x64xf32, #tpu.memory_space<vmem>>, vector<1x32x64xf32>
    %147 = vector.shape_cast %146 : vector<1x32x64xf32> to vector<32x64xf32>
    %cst_51 = arith.constant dense<0.000000e+00> : vector<8x64xf32>
    %148 = tpu.matmul %145, %147, %cst_51 {dimension_numbers = #tpu.dot_dimension_numbers<[1], [0], [0], [1], [0, 0, 1, 1], [], []>} : vector<8x32xf32>, vector<32x64xf32>, vector<8x64xf32> -> vector<8x64xf32>
    %149 = vector.broadcast %31 : vector<1x64xf32> to vector<8x64xf32>
    %150 = arith.addf %148, %149 : vector<8x64xf32>
    %cst_52 = arith.constant 5.000000e-01 : f32
    %151 = vector.broadcast %cst_52 : f32 to vector<8x64xf32>
    %152 = arith.mulf %151, %150 : vector<8x64xf32>
    %cst_53 = arith.constant 0.707106769 : f32
    %153 = vector.broadcast %cst_53 : f32 to vector<8x64xf32>
    %154 = arith.mulf %150, %153 : vector<8x64xf32>
    %155 = math.erf %154 : vector<8x64xf32>
    %cst_54 = arith.constant 1.000000e+00 : f32
    %156 = vector.broadcast %cst_54 : f32 to vector<8x64xf32>
    %157 = arith.addf %156, %155 : vector<8x64xf32>
    %158 = arith.mulf %152, %157 : vector<8x64xf32>
    %c0_55 = arith.constant 0 : index
    %c0_56 = arith.constant 0 : index
    %c0_57 = arith.constant 0 : index
    %159 = vector.load %arg6[%c0_55, %c0_56, %c0_57] : memref<2x64x32xf32, #tpu.memory_space<vmem>>, vector<1x64x32xf32>
    %160 = vector.shape_cast %159 : vector<1x64x32xf32> to vector<64x32xf32>
    %cst_58 = arith.constant dense<0.000000e+00> : vector<8x32xf32>
    %161 = tpu.matmul %158, %160, %cst_58 {dimension_numbers = #tpu.dot_dimension_numbers<[1], [0], [0], [1], [0, 0, 1, 1], [], []>} : vector<8x64xf32>, vector<64x32xf32>, vector<8x32xf32> -> vector<8x32xf32>
    %162 = vector.broadcast %32 : vector<1x32xf32> to vector<8x32xf32>
    %163 = arith.addf %161, %162 : vector<8x32xf32>
    %164 = arith.addf %163, %145 : vector<8x32xf32>
    %cst_59 = arith.constant dense<0.000000e+00> : vector<8xf32>
    %165 = vector.multi_reduction <add>, %164, %cst_59 [1] : vector<8x32xf32> to vector<8xf32>
    %166 = vector.shape_cast %165 : vector<8xf32> to vector<8x1xf32>
    %cst_60 = arith.constant 3.200000e+01 : f32
    %167 = vector.broadcast %cst_60 : f32 to vector<8x1xf32>
    %168 = arith.divf %166, %167 : vector<8x1xf32>
    %169 = vector.broadcast %168 : vector<8x1xf32> to vector<8x32xf32>
    %170 = arith.subf %164, %169 : vector<8x32xf32>
    %171 = arith.mulf %170, %170 : vector<8x32xf32>
    %cst_61 = arith.constant dense<0.000000e+00> : vector<8xf32>
    %172 = vector.multi_reduction <add>, %171, %cst_61 [1] : vector<8x32xf32> to vector<8xf32>
    %173 = vector.shape_cast %172 : vector<8xf32> to vector<8x1xf32>
    %cst_62 = arith.constant 3.200000e+01 : f32
    %174 = vector.broadcast %cst_62 : f32 to vector<8x1xf32>
    %175 = arith.divf %173, %174 : vector<8x1xf32>
    %cst_63 = arith.constant 9.99999996E-13 : f32
    %176 = vector.broadcast %cst_63 : f32 to vector<8x1xf32>
    %177 = arith.addf %175, %176 : vector<8x1xf32>
    %178 = math.rsqrt %177 : vector<8x1xf32>
    %179 = vector.broadcast %178 : vector<8x1xf32> to vector<8x32xf32>
    %180 = arith.mulf %170, %179 : vector<8x32xf32>
    %181 = vector.broadcast %33 : vector<1x32xf32> to vector<8x32xf32>
    %182 = arith.mulf %180, %181 : vector<8x32xf32>
    %183 = vector.broadcast %34 : vector<1x32xf32> to vector<8x32xf32>
    %184 = arith.addf %182, %183 : vector<8x32xf32>
    %c1 = arith.constant 1 : index
    %c0_64 = arith.constant 0 : index
    %c0_65 = arith.constant 0 : index
    %185 = vector.load %arg7[%c1, %c0_64, %c0_65] : memref<2x8x96xf32, #tpu.memory_space<vmem>>, vector<1x8x96xf32>
    %186 = vector.shape_cast %185 : vector<1x8x96xf32> to vector<8x96xf32>
    %187 = vector.extract_strided_slice %186 {offsets = [0, 0], sizes = [1, 96], strides = [1, 1]} : vector<8x96xf32> to vector<1x96xf32>
    %188 = vector.extract_strided_slice %186 {offsets = [1, 0], sizes = [1, 32], strides = [1, 1]} : vector<8x96xf32> to vector<1x32xf32>
    %189 = vector.extract_strided_slice %186 {offsets = [2, 0], sizes = [1, 32], strides = [1, 1]} : vector<8x96xf32> to vector<1x32xf32>
    %190 = vector.extract_strided_slice %186 {offsets = [3, 0], sizes = [1, 32], strides = [1, 1]} : vector<8x96xf32> to vector<1x32xf32>
    %191 = vector.extract_strided_slice %186 {offsets = [4, 0], sizes = [1, 64], strides = [1, 1]} : vector<8x96xf32> to vector<1x64xf32>
    %192 = vector.extract_strided_slice %186 {offsets = [5, 0], sizes = [1, 32], strides = [1, 1]} : vector<8x96xf32> to vector<1x32xf32>
    %193 = vector.extract_strided_slice %186 {offsets = [6, 0], sizes = [1, 32], strides = [1, 1]} : vector<8x96xf32> to vector<1x32xf32>
    %194 = vector.extract_strided_slice %186 {offsets = [7, 0], sizes = [1, 32], strides = [1, 1]} : vector<8x96xf32> to vector<1x32xf32>
    %c1_66 = arith.constant 1 : index
    %c0_67 = arith.constant 0 : index
    %c0_68 = arith.constant 0 : index
    %195 = vector.load %arg3[%c1_66, %c0_67, %c0_68] : memref<2x32x96xf32, #tpu.memory_space<vmem>>, vector<1x32x96xf32>
    %196 = vector.shape_cast %195 : vector<1x32x96xf32> to vector<32x96xf32>
    %cst_69 = arith.constant dense<0.000000e+00> : vector<8x96xf32>
    %197 = tpu.matmul %184, %196, %cst_69 {dimension_numbers = #tpu.dot_dimension_numbers<[1], [0], [0], [1], [0, 0, 1, 1], [], []>} : vector<8x32xf32>, vector<32x96xf32>, vector<8x96xf32> -> vector<8x96xf32>
    %198 = vector.broadcast %187 : vector<1x96xf32> to vector<8x96xf32>
    %199 = arith.addf %197, %198 : vector<8x96xf32>
    %c1_70 = arith.constant 1 : index
    %c0_71 = arith.constant 0 : index
    %c0_72 = arith.constant 0 : index
    %200 = vector.load %arg4[%c1_70, %c0_71, %c0_72] : memref<2x32x32xf32, #tpu.memory_space<vmem>>, vector<1x32x32xf32>
    %201 = vector.shape_cast %200 : vector<1x32x32xf32> to vector<32x32xf32>
    %cst_73 = arith.constant 0.000000e+00 : f32
    %202 = vector.broadcast %cst_73 : f32 to vector<8x32xf32>
    %203 = vector.extract_strided_slice %199 {offsets = [0, 0], sizes = [8, 8], strides = [1, 1]} : vector<8x96xf32> to vector<8x8xf32>
    %204 = vector.extract_strided_slice %199 {offsets = [0, 32], sizes = [8, 8], strides = [1, 1]} : vector<8x96xf32> to vector<8x8xf32>
    %205 = vector.extract_strided_slice %199 {offsets = [0, 64], sizes = [8, 8], strides = [1, 1]} : vector<8x96xf32> to vector<8x8xf32>
    %cst_74 = arith.constant dense<0.000000e+00> : vector<8x8xf32>
    %206 = tpu.matmul %203, %204, %cst_74 {dimension_numbers = #tpu.dot_dimension_numbers<[1], [1], [0], [0], [0, 0, 1, 0], [], []>} : vector<8x8xf32>, vector<8x8xf32>, vector<8x8xf32> -> vector<8x8xf32>
    %cst_75 = arith.constant 0.353553385 : f32
    %207 = vector.broadcast %cst_75 : f32 to vector<8x8xf32>
    %208 = arith.mulf %206, %207 : vector<8x8xf32>
    %cst_76 = arith.constant dense<0xFF800000> : vector<8xf32>
    %209 = vector.multi_reduction <maximumf>, %208, %cst_76 [1] : vector<8x8xf32> to vector<8xf32>
    %210 = vector.shape_cast %209 : vector<8xf32> to vector<8x1xf32>
    %211 = vector.broadcast %210 : vector<8x1xf32> to vector<8x8xf32>
    %212 = arith.subf %208, %211 : vector<8x8xf32>
    %213 = math.exp %212 : vector<8x8xf32>
    %cst_77 = arith.constant dense<0.000000e+00> : vector<8xf32>
    %214 = vector.multi_reduction <add>, %213, %cst_77 [1] : vector<8x8xf32> to vector<8xf32>
    %215 = vector.shape_cast %214 : vector<8xf32> to vector<8x1xf32>
    %216 = tpu.reciprocal %215 {approx = true} : vector<8x1xf32> -> vector<8x1xf32>
    %cst_78 = arith.constant dense<0.000000e+00> : vector<8x8xf32>
    %217 = tpu.matmul %213, %205, %cst_78 {dimension_numbers = #tpu.dot_dimension_numbers<[1], [0], [0], [1], [0, 0, 1, 1], [], []>} : vector<8x8xf32>, vector<8x8xf32>, vector<8x8xf32> -> vector<8x8xf32>
    %218 = vector.broadcast %216 : vector<8x1xf32> to vector<8x8xf32>
    %219 = arith.mulf %217, %218 : vector<8x8xf32>
    %220 = vector.extract_strided_slice %201 {offsets = [0, 0], sizes = [8, 32], strides = [1, 1]} : vector<32x32xf32> to vector<8x32xf32>
    %cst_79 = arith.constant dense<0.000000e+00> : vector<8x32xf32>
    %221 = tpu.matmul %219, %220, %cst_79 {dimension_numbers = #tpu.dot_dimension_numbers<[1], [0], [0], [1], [0, 0, 1, 1], [], []>} : vector<8x8xf32>, vector<8x32xf32>, vector<8x32xf32> -> vector<8x32xf32>
    %222 = arith.addf %202, %221 : vector<8x32xf32>
    %223 = vector.extract_strided_slice %199 {offsets = [0, 8], sizes = [8, 8], strides = [1, 1]} : vector<8x96xf32> to vector<8x8xf32>
    %224 = vector.extract_strided_slice %199 {offsets = [0, 40], sizes = [8, 8], strides = [1, 1]} : vector<8x96xf32> to vector<8x8xf32>
    %225 = vector.extract_strided_slice %199 {offsets = [0, 72], sizes = [8, 8], strides = [1, 1]} : vector<8x96xf32> to vector<8x8xf32>
    %cst_80 = arith.constant dense<0.000000e+00> : vector<8x8xf32>
    %226 = tpu.matmul %223, %224, %cst_80 {dimension_numbers = #tpu.dot_dimension_numbers<[1], [1], [0], [0], [0, 0, 1, 0], [], []>} : vector<8x8xf32>, vector<8x8xf32>, vector<8x8xf32> -> vector<8x8xf32>
    %cst_81 = arith.constant 0.353553385 : f32
    %227 = vector.broadcast %cst_81 : f32 to vector<8x8xf32>
    %228 = arith.mulf %226, %227 : vector<8x8xf32>
    %cst_82 = arith.constant dense<0xFF800000> : vector<8xf32>
    %229 = vector.multi_reduction <maximumf>, %228, %cst_82 [1] : vector<8x8xf32> to vector<8xf32>
    %230 = vector.shape_cast %229 : vector<8xf32> to vector<8x1xf32>
    %231 = vector.broadcast %230 : vector<8x1xf32> to vector<8x8xf32>
    %232 = arith.subf %228, %231 : vector<8x8xf32>
    %233 = math.exp %232 : vector<8x8xf32>
    %cst_83 = arith.constant dense<0.000000e+00> : vector<8xf32>
    %234 = vector.multi_reduction <add>, %233, %cst_83 [1] : vector<8x8xf32> to vector<8xf32>
    %235 = vector.shape_cast %234 : vector<8xf32> to vector<8x1xf32>
    %236 = tpu.reciprocal %235 {approx = true} : vector<8x1xf32> -> vector<8x1xf32>
    %cst_84 = arith.constant dense<0.000000e+00> : vector<8x8xf32>
    %237 = tpu.matmul %233, %225, %cst_84 {dimension_numbers = #tpu.dot_dimension_numbers<[1], [0], [0], [1], [0, 0, 1, 1], [], []>} : vector<8x8xf32>, vector<8x8xf32>, vector<8x8xf32> -> vector<8x8xf32>
    %238 = vector.broadcast %236 : vector<8x1xf32> to vector<8x8xf32>
    %239 = arith.mulf %237, %238 : vector<8x8xf32>
    %240 = vector.extract_strided_slice %201 {offsets = [8, 0], sizes = [8, 32], strides = [1, 1]} : vector<32x32xf32> to vector<8x32xf32>
    %cst_85 = arith.constant dense<0.000000e+00> : vector<8x32xf32>
    %241 = tpu.matmul %239, %240, %cst_85 {dimension_numbers = #tpu.dot_dimension_numbers<[1], [0], [0], [1], [0, 0, 1, 1], [], []>} : vector<8x8xf32>, vector<8x32xf32>, vector<8x32xf32> -> vector<8x32xf32>
    %242 = arith.addf %222, %241 : vector<8x32xf32>
    %243 = vector.extract_strided_slice %199 {offsets = [0, 16], sizes = [8, 8], strides = [1, 1]} : vector<8x96xf32> to vector<8x8xf32>
    %244 = vector.extract_strided_slice %199 {offsets = [0, 48], sizes = [8, 8], strides = [1, 1]} : vector<8x96xf32> to vector<8x8xf32>
    %245 = vector.extract_strided_slice %199 {offsets = [0, 80], sizes = [8, 8], strides = [1, 1]} : vector<8x96xf32> to vector<8x8xf32>
    %cst_86 = arith.constant dense<0.000000e+00> : vector<8x8xf32>
    %246 = tpu.matmul %243, %244, %cst_86 {dimension_numbers = #tpu.dot_dimension_numbers<[1], [1], [0], [0], [0, 0, 1, 0], [], []>} : vector<8x8xf32>, vector<8x8xf32>, vector<8x8xf32> -> vector<8x8xf32>
    %cst_87 = arith.constant 0.353553385 : f32
    %247 = vector.broadcast %cst_87 : f32 to vector<8x8xf32>
    %248 = arith.mulf %246, %247 : vector<8x8xf32>
    %cst_88 = arith.constant dense<0xFF800000> : vector<8xf32>
    %249 = vector.multi_reduction <maximumf>, %248, %cst_88 [1] : vector<8x8xf32> to vector<8xf32>
    %250 = vector.shape_cast %249 : vector<8xf32> to vector<8x1xf32>
    %251 = vector.broadcast %250 : vector<8x1xf32> to vector<8x8xf32>
    %252 = arith.subf %248, %251 : vector<8x8xf32>
    %253 = math.exp %252 : vector<8x8xf32>
    %cst_89 = arith.constant dense<0.000000e+00> : vector<8xf32>
    %254 = vector.multi_reduction <add>, %253, %cst_89 [1] : vector<8x8xf32> to vector<8xf32>
    %255 = vector.shape_cast %254 : vector<8xf32> to vector<8x1xf32>
    %256 = tpu.reciprocal %255 {approx = true} : vector<8x1xf32> -> vector<8x1xf32>
    %cst_90 = arith.constant dense<0.000000e+00> : vector<8x8xf32>
    %257 = tpu.matmul %253, %245, %cst_90 {dimension_numbers = #tpu.dot_dimension_numbers<[1], [0], [0], [1], [0, 0, 1, 1], [], []>} : vector<8x8xf32>, vector<8x8xf32>, vector<8x8xf32> -> vector<8x8xf32>
    %258 = vector.broadcast %256 : vector<8x1xf32> to vector<8x8xf32>
    %259 = arith.mulf %257, %258 : vector<8x8xf32>
    %260 = vector.extract_strided_slice %201 {offsets = [16, 0], sizes = [8, 32], strides = [1, 1]} : vector<32x32xf32> to vector<8x32xf32>
    %cst_91 = arith.constant dense<0.000000e+00> : vector<8x32xf32>
    %261 = tpu.matmul %259, %260, %cst_91 {dimension_numbers = #tpu.dot_dimension_numbers<[1], [0], [0], [1], [0, 0, 1, 1], [], []>} : vector<8x8xf32>, vector<8x32xf32>, vector<8x32xf32> -> vector<8x32xf32>
    %262 = arith.addf %242, %261 : vector<8x32xf32>
    %263 = vector.extract_strided_slice %199 {offsets = [0, 24], sizes = [8, 8], strides = [1, 1]} : vector<8x96xf32> to vector<8x8xf32>
    %264 = vector.extract_strided_slice %199 {offsets = [0, 56], sizes = [8, 8], strides = [1, 1]} : vector<8x96xf32> to vector<8x8xf32>
    %265 = vector.extract_strided_slice %199 {offsets = [0, 88], sizes = [8, 8], strides = [1, 1]} : vector<8x96xf32> to vector<8x8xf32>
    %cst_92 = arith.constant dense<0.000000e+00> : vector<8x8xf32>
    %266 = tpu.matmul %263, %264, %cst_92 {dimension_numbers = #tpu.dot_dimension_numbers<[1], [1], [0], [0], [0, 0, 1, 0], [], []>} : vector<8x8xf32>, vector<8x8xf32>, vector<8x8xf32> -> vector<8x8xf32>
    %cst_93 = arith.constant 0.353553385 : f32
    %267 = vector.broadcast %cst_93 : f32 to vector<8x8xf32>
    %268 = arith.mulf %266, %267 : vector<8x8xf32>
    %cst_94 = arith.constant dense<0xFF800000> : vector<8xf32>
    %269 = vector.multi_reduction <maximumf>, %268, %cst_94 [1] : vector<8x8xf32> to vector<8xf32>
    %270 = vector.shape_cast %269 : vector<8xf32> to vector<8x1xf32>
    %271 = vector.broadcast %270 : vector<8x1xf32> to vector<8x8xf32>
    %272 = arith.subf %268, %271 : vector<8x8xf32>
    %273 = math.exp %272 : vector<8x8xf32>
    %cst_95 = arith.constant dense<0.000000e+00> : vector<8xf32>
    %274 = vector.multi_reduction <add>, %273, %cst_95 [1] : vector<8x8xf32> to vector<8xf32>
    %275 = vector.shape_cast %274 : vector<8xf32> to vector<8x1xf32>
    %276 = tpu.reciprocal %275 {approx = true} : vector<8x1xf32> -> vector<8x1xf32>
    %cst_96 = arith.constant dense<0.000000e+00> : vector<8x8xf32>
    %277 = tpu.matmul %273, %265, %cst_96 {dimension_numbers = #tpu.dot_dimension_numbers<[1], [0], [0], [1], [0, 0, 1, 1], [], []>} : vector<8x8xf32>, vector<8x8xf32>, vector<8x8xf32> -> vector<8x8xf32>
    %278 = vector.broadcast %276 : vector<8x1xf32> to vector<8x8xf32>
    %279 = arith.mulf %277, %278 : vector<8x8xf32>
    %280 = vector.extract_strided_slice %201 {offsets = [24, 0], sizes = [8, 32], strides = [1, 1]} : vector<32x32xf32> to vector<8x32xf32>
    %cst_97 = arith.constant dense<0.000000e+00> : vector<8x32xf32>
    %281 = tpu.matmul %279, %280, %cst_97 {dimension_numbers = #tpu.dot_dimension_numbers<[1], [0], [0], [1], [0, 0, 1, 1], [], []>} : vector<8x8xf32>, vector<8x32xf32>, vector<8x32xf32> -> vector<8x32xf32>
    %282 = arith.addf %262, %281 : vector<8x32xf32>
    %283 = vector.broadcast %188 : vector<1x32xf32> to vector<8x32xf32>
    %284 = arith.addf %282, %283 : vector<8x32xf32>
    %285 = arith.addf %284, %184 : vector<8x32xf32>
    %cst_98 = arith.constant dense<0.000000e+00> : vector<8xf32>
    %286 = vector.multi_reduction <add>, %285, %cst_98 [1] : vector<8x32xf32> to vector<8xf32>
    %287 = vector.shape_cast %286 : vector<8xf32> to vector<8x1xf32>
    %cst_99 = arith.constant 3.200000e+01 : f32
    %288 = vector.broadcast %cst_99 : f32 to vector<8x1xf32>
    %289 = arith.divf %287, %288 : vector<8x1xf32>
    %290 = vector.broadcast %289 : vector<8x1xf32> to vector<8x32xf32>
    %291 = arith.subf %285, %290 : vector<8x32xf32>
    %292 = arith.mulf %291, %291 : vector<8x32xf32>
    %cst_100 = arith.constant dense<0.000000e+00> : vector<8xf32>
    %293 = vector.multi_reduction <add>, %292, %cst_100 [1] : vector<8x32xf32> to vector<8xf32>
    %294 = vector.shape_cast %293 : vector<8xf32> to vector<8x1xf32>
    %cst_101 = arith.constant 3.200000e+01 : f32
    %295 = vector.broadcast %cst_101 : f32 to vector<8x1xf32>
    %296 = arith.divf %294, %295 : vector<8x1xf32>
    %cst_102 = arith.constant 9.99999996E-13 : f32
    %297 = vector.broadcast %cst_102 : f32 to vector<8x1xf32>
    %298 = arith.addf %296, %297 : vector<8x1xf32>
    %299 = math.rsqrt %298 : vector<8x1xf32>
    %300 = vector.broadcast %299 : vector<8x1xf32> to vector<8x32xf32>
    %301 = arith.mulf %291, %300 : vector<8x32xf32>
    %302 = vector.broadcast %189 : vector<1x32xf32> to vector<8x32xf32>
    %303 = arith.mulf %301, %302 : vector<8x32xf32>
    %304 = vector.broadcast %190 : vector<1x32xf32> to vector<8x32xf32>
    %305 = arith.addf %303, %304 : vector<8x32xf32>
    %c1_103 = arith.constant 1 : index
    %c0_104 = arith.constant 0 : index
    %c0_105 = arith.constant 0 : index
    %306 = vector.load %arg5[%c1_103, %c0_104, %c0_105] : memref<2x32x64xf32, #tpu.memory_space<vmem>>, vector<1x32x64xf32>
    %307 = vector.shape_cast %306 : vector<1x32x64xf32> to vector<32x64xf32>
    %cst_106 = arith.constant dense<0.000000e+00> : vector<8x64xf32>
    %308 = tpu.matmul %305, %307, %cst_106 {dimension_numbers = #tpu.dot_dimension_numbers<[1], [0], [0], [1], [0, 0, 1, 1], [], []>} : vector<8x32xf32>, vector<32x64xf32>, vector<8x64xf32> -> vector<8x64xf32>
    %309 = vector.broadcast %191 : vector<1x64xf32> to vector<8x64xf32>
    %310 = arith.addf %308, %309 : vector<8x64xf32>
    %cst_107 = arith.constant 5.000000e-01 : f32
    %311 = vector.broadcast %cst_107 : f32 to vector<8x64xf32>
    %312 = arith.mulf %311, %310 : vector<8x64xf32>
    %cst_108 = arith.constant 0.707106769 : f32
    %313 = vector.broadcast %cst_108 : f32 to vector<8x64xf32>
    %314 = arith.mulf %310, %313 : vector<8x64xf32>
    %315 = math.erf %314 : vector<8x64xf32>
    %cst_109 = arith.constant 1.000000e+00 : f32
    %316 = vector.broadcast %cst_109 : f32 to vector<8x64xf32>
    %317 = arith.addf %316, %315 : vector<8x64xf32>
    %318 = arith.mulf %312, %317 : vector<8x64xf32>
    %c1_110 = arith.constant 1 : index
    %c0_111 = arith.constant 0 : index
    %c0_112 = arith.constant 0 : index
    %319 = vector.load %arg6[%c1_110, %c0_111, %c0_112] : memref<2x64x32xf32, #tpu.memory_space<vmem>>, vector<1x64x32xf32>
    %320 = vector.shape_cast %319 : vector<1x64x32xf32> to vector<64x32xf32>
    %cst_113 = arith.constant dense<0.000000e+00> : vector<8x32xf32>
    %321 = tpu.matmul %318, %320, %cst_113 {dimension_numbers = #tpu.dot_dimension_numbers<[1], [0], [0], [1], [0, 0, 1, 1], [], []>} : vector<8x64xf32>, vector<64x32xf32>, vector<8x32xf32> -> vector<8x32xf32>
    %322 = vector.broadcast %192 : vector<1x32xf32> to vector<8x32xf32>
    %323 = arith.addf %321, %322 : vector<8x32xf32>
    %324 = arith.addf %323, %305 : vector<8x32xf32>
    %cst_114 = arith.constant dense<0.000000e+00> : vector<8xf32>
    %325 = vector.multi_reduction <add>, %324, %cst_114 [1] : vector<8x32xf32> to vector<8xf32>
    %326 = vector.shape_cast %325 : vector<8xf32> to vector<8x1xf32>
    %cst_115 = arith.constant 3.200000e+01 : f32
    %327 = vector.broadcast %cst_115 : f32 to vector<8x1xf32>
    %328 = arith.divf %326, %327 : vector<8x1xf32>
    %329 = vector.broadcast %328 : vector<8x1xf32> to vector<8x32xf32>
    %330 = arith.subf %324, %329 : vector<8x32xf32>
    %331 = arith.mulf %330, %330 : vector<8x32xf32>
    %cst_116 = arith.constant dense<0.000000e+00> : vector<8xf32>
    %332 = vector.multi_reduction <add>, %331, %cst_116 [1] : vector<8x32xf32> to vector<8xf32>
    %333 = vector.shape_cast %332 : vector<8xf32> to vector<8x1xf32>
    %cst_117 = arith.constant 3.200000e+01 : f32
    %334 = vector.broadcast %cst_117 : f32 to vector<8x1xf32>
    %335 = arith.divf %333, %334 : vector<8x1xf32>
    %cst_118 = arith.constant 9.99999996E-13 : f32
    %336 = vector.broadcast %cst_118 : f32 to vector<8x1xf32>
    %337 = arith.addf %335, %336 : vector<8x1xf32>
    %338 = math.rsqrt %337 : vector<8x1xf32>
    %339 = vector.broadcast %338 : vector<8x1xf32> to vector<8x32xf32>
    %340 = arith.mulf %330, %339 : vector<8x32xf32>
    %341 = vector.broadcast %193 : vector<1x32xf32> to vector<8x32xf32>
    %342 = arith.mulf %340, %341 : vector<8x32xf32>
    %343 = vector.broadcast %194 : vector<1x32xf32> to vector<8x32xf32>
    %344 = arith.addf %342, %343 : vector<8x32xf32>
    %c0_119 = arith.constant 0 : index
    %c0_120 = arith.constant 0 : index
    %345 = vector.load %arg8[%c0_119, %c0_120] : memref<32x32xf32, #tpu.memory_space<vmem>>, vector<32x32xf32>
    %cst_121 = arith.constant dense<0.000000e+00> : vector<8x32xf32>
    %346 = tpu.matmul %344, %345, %cst_121 {dimension_numbers = #tpu.dot_dimension_numbers<[1], [0], [0], [1], [0, 0, 1, 1], [], []>} : vector<8x32xf32>, vector<32x32xf32>, vector<8x32xf32> -> vector<8x32xf32>
    %347 = vector.extract_strided_slice %0 {offsets = [2, 0], sizes = [1, 32], strides = [1, 1]} : vector<8x32xf32> to vector<1x32xf32>
    %348 = vector.broadcast %347 : vector<1x32xf32> to vector<8x32xf32>
    %349 = arith.addf %346, %348 : vector<8x32xf32>
    %cst_122 = arith.constant 0.000000e+00 : f32
    %350 = vector.broadcast %cst_122 : f32 to vector<8x32xf32>
    %351 = arith.maximumf %349, %350 : vector<8x32xf32>
    %c0_123 = arith.constant 0 : index
    %c0_124 = arith.constant 0 : index
    %352 = vector.load %arg9[%c0_123, %c0_124] : memref<32x32xf32, #tpu.memory_space<vmem>>, vector<32x32xf32>
    %cst_125 = arith.constant dense<0.000000e+00> : vector<8x32xf32>
    %353 = tpu.matmul %351, %352, %cst_125 {dimension_numbers = #tpu.dot_dimension_numbers<[1], [0], [0], [1], [0, 0, 1, 1], [], []>} : vector<8x32xf32>, vector<32x32xf32>, vector<8x32xf32> -> vector<8x32xf32>
    %354 = vector.extract_strided_slice %0 {offsets = [3, 0], sizes = [1, 32], strides = [1, 1]} : vector<8x32xf32> to vector<1x32xf32>
    %355 = vector.broadcast %354 : vector<1x32xf32> to vector<8x32xf32>
    %356 = arith.addf %353, %355 : vector<8x32xf32>
    %cst_126 = arith.constant 0.000000e+00 : f32
    %357 = vector.broadcast %cst_126 : f32 to vector<8x32xf32>
    %358 = arith.maximumf %356, %357 : vector<8x32xf32>
    %c0_127 = arith.constant 0 : index
    %c0_128 = arith.constant 0 : index
    %c0_129 = arith.constant 0 : index
    %359 = vector.load %arg10[%c0_127, %c0_128, %c0_129] : memref<1x8x32xf32, #tpu.memory_space<vmem>>, vector<1x8x32xf32>
    %360 = vector.shape_cast %359 : vector<1x8x32xf32> to vector<8x32xf32>
    %361 = vector.shape_cast %358 : vector<8x32xf32> to vector<1x8x32xf32>
    tpu.vector_store %arg10[%c0_127, %c0_128, %c0_129], %361 {strides = array<i32>} : memref<1x8x32xf32, #tpu.memory_space<vmem>>, vector<1x8x32xf32>,
    return
  }
  func.func @transform_0(%arg0: i32) -> (i32, i32, i32) {
    %c0_i32 = arith.constant 0 : i32
    %c0_i32_0 = arith.constant 0 : i32
    %c0_i32_1 = arith.constant 0 : i32
    return %arg0, %c0_i32, %c0_i32_0 : i32, i32, i32
  }
  func.func @transform_1(%arg0: i32) -> (i32, i32) {
    %c0_i32 = arith.constant 0 : i32
    %c0_i32_0 = arith.constant 0 : i32
    %c0_i32_1 = arith.constant 0 : i32
    return %c0_i32, %c0_i32_0 : i32, i32
  }
  func.func @transform_2(%arg0: i32) -> (i32, i32, i32) {
    %c0_i32 = arith.constant 0 : i32
    %c0_i32_0 = arith.constant 0 : i32
    %c0_i32_1 = arith.constant 0 : i32
    %c0_i32_2 = arith.constant 0 : i32
    return %c0_i32, %c0_i32_0, %c0_i32_1 : i32, i32, i32
  }
  func.func @transform_3(%arg0: i32) -> (i32, i32, i32) {
    %c0_i32 = arith.constant 0 : i32
    %c0_i32_0 = arith.constant 0 : i32
    %c0_i32_1 = arith.constant 0 : i32
    %c0_i32_2 = arith.constant 0 : i32
    return %c0_i32, %c0_i32_0, %c0_i32_1 : i32, i32, i32
  }
  func.func @transform_4(%arg0: i32) -> (i32, i32, i32) {
    %c0_i32 = arith.constant 0 : i32
    %c0_i32_0 = arith.constant 0 : i32
    %c0_i32_1 = arith.constant 0 : i32
    %c0_i32_2 = arith.constant 0 : i32
    return %c0_i32, %c0_i32_0, %c0_i32_1 : i32, i32, i32
  }
  func.func @transform_5(%arg0: i32) -> (i32, i32, i32) {
    %c0_i32 = arith.constant 0 : i32
    %c0_i32_0 = arith.constant 0 : i32
    %c0_i32_1 = arith.constant 0 : i32
    %c0_i32_2 = arith.constant 0 : i32
    return %c0_i32, %c0_i32_0, %c0_i32_1 : i32, i32, i32
  }
  func.func @transform_6(%arg0: i32) -> (i32, i32, i32) {
    %c0_i32 = arith.constant 0 : i32
    %c0_i32_0 = arith.constant 0 : i32
    %c0_i32_1 = arith.constant 0 : i32
    %c0_i32_2 = arith.constant 0 : i32
    return %c0_i32, %c0_i32_0, %c0_i32_1 : i32, i32, i32
  }
  func.func @transform_7(%arg0: i32) -> (i32, i32) {
    %c0_i32 = arith.constant 0 : i32
    %c0_i32_0 = arith.constant 0 : i32
    %c0_i32_1 = arith.constant 0 : i32
    return %c0_i32, %c0_i32_0 : i32, i32
  }
  func.func @transform_8(%arg0: i32) -> (i32, i32) {
    %c0_i32 = arith.constant 0 : i32
    %c0_i32_0 = arith.constant 0 : i32
    %c0_i32_1 = arith.constant 0 : i32
    return %c0_i32, %c0_i32_0 : i32, i32
  }
  func.func @transform_9(%arg0: i32) -> (i32, i32, i32) {
    %c0_i32 = arith.constant 0 : i32
    %c0_i32_0 = arith.constant 0 : i32
    %c0_i32_1 = arith.constant 0 : i32
    return %arg0, %c0_i32, %c0_i32_0 : i32, i32, i32
  }
}

</mosaic_0001>

<bundles_post_ra>
// kernel: bert_base_forward.1
= control target key start
LH: loop header
LB: loop body
LE: loop exit
PB: predicated region body
PF: predicated region fallthrough
CT: control target
= control target key end

     0   :  { %14 = vsyncpa [#allocation3], 0  ;;  %s2299_s0 = inlined_call_operand.vmem [shape: f32[2,8,32], index: 0, kind: input, shape index: {}]   ;;  %s2300_s1 = inlined_call_operand.vmem [shape: f32[8,32], index: 1, kind: input, shape index: {}]   ;;  %s2301_s2 = inlined_call_operand.vmem [shape: f32[2,32,96], index: 2, kind: input, shape index: {}]   ;;  %s2302_s3 = inlined_call_operand.vmem [shape: f32[2,32,32], index: 3, kind: input, shape index: {}]   ;;  %s2303_s4 = inlined_call_operand.vmem [shape: f32[2,32,64], index: 4, kind: input, shape index: {}]   ;;  %s2304_s5 = inlined_call_operand.vmem [shape: f32[2,64,32], index: 5, kind: input, shape index: {}]   ;;  %s2305_s6 = inlined_call_operand.vmem [shape: f32[2,8,96], index: 6, kind: input, shape index: {}]   ;;  %s2306_s7 = inlined_call_operand.vmem [shape: f32[32,32], index: 7, kind: input, shape index: {}]   ;;  %s2307_s8 = inlined_call_operand.vmem [shape: f32[32,32], index: 8, kind: input, shape index: {}]   ;;  %s2308_s9 = inlined_call_operand.hbm [shape: f32[2,8,32], index: 9, kind: output, shape index: {}]  }
   0x1   :  { %16 = vsyncpa [#allocation3 + $0x1], 0  ;;  %s1904_s30 = smov 0   ;;  %s1906_s10 = smov 0  }
   0x2   :  { %s1908_s11 = smov 0   ;;  %s1910_s12 = smov 0  }
   0x3 LB: > { %s1925_s13 = sadd.s32 4294967295, %s1840_s12   ;;  %s1605_s14 = sadd.s32 4294967294, %s1840_s12   ;;  %s1840_s12 = sphi %s1910_s12, %s2328_s12   ;;  %s1836_s11 = sphi %s1908_s11, %s2327_s11   ;;  %s1832_s10 = sphi %s1906_s10, %s2326_s10   ;;  %s1828_s30 = sphi %s1904_s30, %s2325_s30  }
   0x4   : > { %s1929_s15 = sadd.s32 1, %s1840_s12   ;;  %s223_s16 = sadd.s32 1, %s1836_s11 }
   0x5   : > { %s220_s17 = ssub.s32 %s1840_s12, %s1929_s15  ;;  %p233_p0 = scmp.ne.s32.totalorder %s1836_s11, %s1832_s10 }
   0x6   : > { %p221_p1 = scmp.eq.s32.totalorder %s220_s17, 0  ;;  %p234_p2 = scmp.eq.s32.totalorder %s1925_s13, 1 }
   0x7   : > { %p239_p3 = scmp.ne.s32.totalorder %s1832_s10, %s1828_s30  ;;  %p240_p4 = scmp.eq.s32.totalorder %s1605_s14, 1 }
   0x8   : > { %s1940_s18 = scalar_select %p221_p1, %s1836_s11, %s223_s16  }
   0x9   : > { %p1942_p5 = por %p234_p2, %p233_p0  ;;  %p1946_p6 = por %p240_p4, %p239_p3 }
   0xa   : > { %p1608_p7 = scmp.ge.s32.totalorder %s1840_s12, 1  ;;  %p289_p8 = scmp.lt.s32.totalorder %s1840_s12, 3 }
   0xc   : > { %p290_p9 = pnand %p1608_p7, %p289_p8 }
   0xd   : > { %p324_p10 = scmp.lt.s32.totalorder (!%p290_p9), %s1925_s13, 1  ;;  %s2315_s26 = smov (!%p290_p9), 64  }
   0xe   : > { %293 = sbr.rel (%p290_p9) target bundleno = 4627 (0x1213), region = 56  ;;  %s1844_s27 = smov (!%p290_p9), 96  }
   0xf   : > { %s1845_s28 = smov (!%p290_p9), 88   ;;  %s2312_s29 = smov (!%p290_p9), 120  }
  0x10   : > { %s2314_s14 = smov (!%p290_p9), 104   ;;  %s1848_s16 = smov (!%p290_p9), 80  }
  0x11   : > { %s2313_s17 = smov (!%p290_p9), 112   ;;  %s2309_s23 = smov (!%p290_p9), 40  }
  0x12   : > { %s2324_s24 = smov (!%p290_p9), 40  }
  0x13   : > { %s325_s21 = scalar_select %p324_p10, %s1925_s13, 1  ;;  %vm330_vm0 = vcmask 261120   ;;  %v1842_v2 = vmov 32.0   ;;  %v368_v14 = vld [vmem:[%s2301_s2 + $0x18] sm:$0xff]  ;;  %v367_v15 = vld [vmem:[%s2301_s2 + $0x10] sm:$0xff]  ;;  %v366_v16 = vld [vmem:[%s2301_s2 + $0x8] sm:$0xff] }
  0x14   : > { %1729 = vrcp.f32 %v1842_v2  ;;  %385 = vmatpush.msra.mxu0 %v368_v14  ;;  %v365_v17 = vld [vmem:[%s2301_s2] sm:$0xff]  ;;  %vm400_vm5 = vcmask 64512   ;;  %vm865_vm13 = vcmask 523264  }
  0x15   : > { %s1610_s22 = sshll.u32 %s325_s21, 3  ;;  %v328_v26 = vld [vmem:[%s2300_s1] sm:$0xff]  ;;  %s2311_s21 = smov 56  }
  0x16   : > { %s327_s25 = scalar_lea.vmem %s2299_s0, %s1610_s22  ;;  %386 = vmatpush.msra.mxu0 %v367_v15  ;;  %v360_v28 = vperm.slane %v328_v26, 0  ;;  %v362_v31 = vperm.slane %v328_v26, 1  ;;  %v1985_v34 = vld [vmem:[%s2305_s6] sm:$0xff]  ;;  %s1851_s22 = smov 72  }
  0x17   : > { %v329_v0 = vld [vmem:[%s327_s25] sm:$0xff]  ;;  %v369_v35 = vperm.slane %v1985_v34, 0  ;;  %s321_s25 = sand.u32 1, %s1832_s10  }
  0x18   : > { %v331_v1 = vsel %vm330_vm0, %v329_v0, 0.0  ;;  %387 = vmatpush.msra.mxu0 %v366_v16  ;;  %v393_v60 = vld [vmem:[%s2302_s3] sm:$0xff] }
  0x19   : > { %332 = vadd.xlane.f32.xlu0 %v331_v1 }
  0x1a   : > { %v1730_v3 = vpop.eup %1729  ;;  %388 = vmatpush.msra.mxu0 %v365_v17 }
  0x1b   : > { %v335_v4 = vmul.f32 32.0, %v1730_v3  ;;  %vm339_vm1 = vweird.f32 %v1730_v3 }
  0x1d   : > { %v336_v5 = vsub.f32 1.0, %v335_v4 }
  0x1f   : > { %v337_v6 = vmul.f32 %v1730_v3, %v336_v5 }
  0x21   : > { %v338_v7 = vadd.f32 %v1730_v3, %v337_v6 }
  0x23   : > { %v1958_v8 = vsel %vm339_vm1, %v1730_v3, %v338_v7 }
  0x8c   : > { %v333_v9 = vpop.xlane.xlu0 %332 }
  0x8d   : > { %v341_v10 = vmul.f32 %v1958_v8, %v333_v9 }
  0x8f   : > { %v342_v11 = vsub.f32 %v329_v0, %v341_v10 }
  0x91   : > { %v343_v12 = vmul.f32 %v342_v11, %v342_v11 }
  0x93   : > { %v344_v13 = vsel %vm330_vm0, %v343_v12, 0.0 }
  0x94   : > { %345 = vadd.xlane.f32.xlu0 %v344_v13 }
 0x107   : > { %v346_v18 = vpop.xlane.xlu0 %345 }
 0x108   : > { %v347_v19 = vmul.f32 %v346_v18, %v1958_v8  ;;  %v394_v18 = vld [vmem:[%s2302_s3 + $0x8] sm:$0xff] }
 0x10a   : > { %v348_v20 = vadd.f32 1e-12, %v347_v19 }
 0x10c   : > { %1731 = vrsqrt.f32 %v348_v20  ;;  %vm355_vm3 = vweird.f32 %v348_v20 }
 0x112   : > { %v1732_v21 = vpop.eup %1731 }
 0x113   : > { %v350_v22 = vmul.f32 %v1732_v21, %v348_v20  ;;  %vm356_vm2 = vweird.f32 %v1732_v21 }
 0x114   : > { %vm357_vm4 = vmor %vm355_vm3, %vm356_vm2 }
 0x115   : > { %v351_v23 = vmul.f32 %v1732_v21, %v350_v22 }
 0x117   : > { %v352_v24 = vmul.f32 0.5, %v351_v23 }
 0x119   : > { %v353_v25 = vsub.f32 1.5, %v352_v24 }
 0x11b   : > { %v354_v27 = vmul.f32 %v1732_v21, %v353_v25 }
 0x11d   : > { %v358_v29 = vsel %vm357_vm4, %v1732_v21, %v354_v27 }
 0x11e   : > { %v359_v30 = vmul.f32 %v358_v29, %v342_v11  ;;  %v396_v29 = vld [vmem:[%s2302_s3 + $0x18] sm:$0xff] }
 0x120   : > { %v361_v32 = vmul.f32 %v360_v28, %v359_v30  ;;  %v395_v30 = vld [vmem:[%s2302_s3 + $0x10] sm:$0xff] }
 0x122   : > { %v1978_v33 = vadd.f32 %v362_v31, %v361_v32 }
 0x124   : > { %1611 = vmatmul.msk.f32.vlgmr.msra.gmra.mxu0 %vm330_vm0, %v1978_v33 }
 0x1a1   : > { %v390_v36 = vpop.f32.mrf.mxu0 }
 0x1a2   : > { %v1988_v37 = vadd.f32 %v390_v36, %v369_v35 }
 0x1a4   : > { %436 = vrot.lane.b32.xlu2 %v1988_v37, %s2315_s26  ;;  %398 = vrot.lane.b32.xlu1 %v1988_v37, %s1844_s27  ;;  %s1609_s26 = sshll.u32 %s321_s25, 3 }
 0x1ac   : > { %465 = vrot.lane.b32.xlu2 %v1988_v37, %s1845_s28 }
 0x1b4   : > { %463 = vrot.lane.b32.xlu2 %v1988_v37, %s2312_s29  ;;  %s1675_s29 = sshll.u32 %s1925_s13, 3 }
 0x1bc   : > { %665 = vrot.lane.b32.xlu2 %v1988_v37, %s2314_s14 }
 0x1c4   : > { %577 = vrot.lane.b32.xlu2 %v1988_v37, %s1848_s16 }
 0x1cc   : > { %575 = vrot.lane.b32.xlu2 %v1988_v37, %s2313_s17 }
 0x1fe   : > { %v437_v38 = vpop.permute.xlu2 %436 }
 0x1ff   : > { %457 = vmatpush.msra.mxu2 %v437_v38 }
 0x206   : > { %v466_v39 = vpop.permute.xlu2 %465 }
 0x207   : > { %1615 = vmatpush.xpose.msk.msra.mxu3 %vm400_vm5, %v466_v39 }
 0x20b   : > { %570 = vmatpush.msrb.mxu3 %v393_v60 }
 0x20e   : > { %v464_v40 = vpop.permute.xlu2 %463 }
 0x20f   : > { %1616 = vmatmul.msk.f32.vlgmr.msra.gmra.mxu3 %vm400_vm5, %v464_v40 }
 0x216   : > { %v666_v41 = vpop.permute.xlu2 %665  ;;  %v399_v42 = vpop.permute.xlu1 %398 }
 0x217   : > { %1612 = vmatpush.xpose.msk.msra.mxu1 %vm400_vm5, %v399_v42 }
 0x21a   : > { %1613 = vmatmul.msk.f32.vlgmr.msra.gmra.mxu1 %vm400_vm5, %v1988_v37 }
 0x21b   : > { %547 = vmatpush.msrb.mxu1 %v394_v18 }
 0x21d   : > { %659 = vmatpush.msra.mxu1 %v395_v30 }
 0x21e   : > { %v578_v43 = vpop.permute.xlu2 %577 }
 0x21f   : > { %1620 = vmatpush.xpose.msk.msrb.mxu0 %vm400_vm5, %v578_v43 }
 0x226   : > { %v576_v44 = vpop.permute.xlu2 %575 }
 0x227   : > { %1621 = vmatmul.msk.f32.vlgmr.msrb.gmra.mxu0 %vm400_vm5, %v576_v44 }
 0x292   : > { %v488_v57 = vpop.f32.mrf.mxu3 }
 0x293   : > { %v491_v58 = vmul.f32 0.35355338, %v488_v57  ;;  %v785_v57 = vld [vmem:[%s2303_s4 + $0x8] sm:$0xff] }
 0x295   : > { %v492_v59 = vsel %vm400_vm5, %v491_v58, -inf }
 0x297   : > { %v422_v45 = vpop.f32.mrf.mxu1 }
 0x298   : > { %v425_v46 = vmul.f32 0.35355338, %v422_v45  ;;  %v755_v45 = vperm.slane %v1985_v34, 1 }
 0x29a   : > { %v426_v47 = vsel %vm400_vm5, %v425_v46, -inf }
 0x29b   : > { %427 = vmax.xlane.f32.xlu1 %v426_v47 }
 0x2a4   : > { %v600_v48 = vpop.f32.mrf.mxu0 }
 0x2a5   : > { %v603_v49 = vmul.f32 0.35355338, %v600_v48 }
 0x2a7   : > { %v604_v50 = vsel %vm400_vm5, %v603_v49, -inf }
 0x2a8   : > { %605 = vmax.xlane.f32.xlu2 %v604_v50 }
 0x2b4   : > { %502 = vrot.lane.b32.xlu1 %v1988_v37, %s2311_s21  ;;  %s2322_s21 = smov 56  }
 0x30e   : > { %v428_v51 = vpop.xlane.xlu1 %427 }
 0x30f   : > { %v429_v52 = vsub.f32 %v425_v46, %v428_v51 }
 0x311   : > { %v430_v53 = vmul.f32 1.442695, %v429_v52 }
 0x313   : > { %1733 = vpow2.f32 %v430_v53 }
 0x319   : > { %v1734_v54 = vpop.eup %1733 }
 0x31a   : > { %1614 = vmatmul.msk.f32.vlgmr.msra.gmra.mxu2 %vm400_vm5, %v1734_v54  ;;  %v432_v55 = vsel %vm400_vm5, %v1734_v54, 0.0 }
 0x31b   : > { %433 = vadd.xlane.f32.xlu0 %v432_v55  ;;  %v606_v2 = vpop.xlane.xlu2 %605 }
 0x31c   : > { %v607_v5 = vsub.f32 %v603_v49, %v606_v2 }
 0x31e   : > { %v608_v7 = vmul.f32 1.442695, %v607_v5 }
 0x326   : > { %v503_v56 = vpop.permute.xlu1 %502 }
 0x327   : > { %523 = vmatpush.msrb.mxu2 %v503_v56  ;;  %v787_v56 = vld [vmem:[%s2303_s4 + $0x18] sm:$0xff] }
 0x32f   : > { %667 = vrot.lane.b32.xlu0 %v1988_v37, %s1851_s22 }
 0x359   : > { %493 = vmax.xlane.f32.xlu0 %v492_v59 }
 0x36d   : > { %704 = vrot.lane.b32.xlu0 %v1988_v37, %s2309_s23  ;;  %s2310_s23 = smov 48  }
 0x38e   : > { %v434_v61 = vpop.xlane.xlu0 %433 }
 0x38f   : > { %1735 = vrcp.f32 %v434_v61 }
 0x395   : > { %v1736_v62 = vpop.eup %1735 }
 0x39d   : > { %v459_v63 = vpop.f32.mrf.mxu2 }
 0x39e   : > { %v462_v0 = vmul.f32 %v1736_v62, %v459_v63 }
 0x3a0   : > { %1619 = vmatmul.msk.f32.vlgmr.msrb.gmra.mxu3 %vm400_vm5, %v462_v0 }
 0x3a1   : > { %v668_v1 = vpop.permute.xlu0 %667 }
 0x3a2   : > { %1624 = vmatpush.xpose.msk.msra.mxu3 %vm400_vm5, %v668_v1 }
 0x3a8   : > { %1625 = vmatmul.msk.f32.vlgmr.msra.gmra.mxu3 %vm400_vm5, %v666_v41 }
 0x3cc   : > { %v494_v3 = vpop.xlane.xlu0 %493 }
 0x3cd   : > { %v495_v4 = vsub.f32 %v491_v58, %v494_v3  ;;  %v784_v58 = vld [vmem:[%s2303_s4] sm:$0xff] }
 0x3cf   : > { %v496_v6 = vmul.f32 1.442695, %v495_v4  ;;  %v780_v4 = vperm.slane %v1985_v34, 2 }
 0x3d1   : > { %1737 = vpow2.f32 %v496_v6 }
 0x3d2   : > { %1739 = vpow2.f32 %v608_v7  ;;  %v782_v7 = vperm.slane %v1985_v34, 3 }
 0x3d7   : > { %v1738_v9 = vpop.eup %1737 }
 0x3d8   : > { %1617 = vmatmul.msk.f32.vlgmr.msrb.gmra.mxu2 %vm400_vm5, %v1738_v9  ;;  %v498_v10 = vsel %vm400_vm5, %v1738_v9, 0.0  ;;  %v1740_v11 = vpop.eup %1739 }
 0x3d9   : > { %499 = vadd.xlane.f32.xlu2 %v498_v10  ;;  %v610_v13 = vsel %vm400_vm5, %v1740_v11, 0.0 }
 0x3df   : > { %v705_v12 = vpop.permute.xlu0 %704 }
 0x3e0   : > { %725 = vmatpush.msra.mxu0 %v705_v12 }
 0x3e1   : > { %611 = vadd.xlane.f32.xlu2 %v610_v13 }
 0x423   : > { %v572_v14 = vpop.f32.mrf.mxu3 }
 0x42b   : > { %v690_v15 = vpop.f32.mrf.mxu3 }
 0x42c   : > { %v693_v16 = vmul.f32 0.35355338, %v690_v15 }
 0x42e   : > { %v694_v17 = vsel %vm400_vm5, %v693_v16, -inf }
 0x42f   : > { %695 = vmax.xlane.f32.xlu1 %v694_v17  ;;  %v863_v17 = vld [vmem:[%s2304_s5 + $0x38] sm:$0xff] }
 0x430   : > { %877 = vmatpush.msrb.mxu3 %v863_v17 }
 0x448   : > { %614 = vrot.lane.b32.xlu1 %v1988_v37, %s2310_s23  ;;  %s2323_s23 = smov 48  }
 0x44c   : > { %v500_v19 = vpop.xlane.xlu2 %499 }
 0x44d   : > { %1741 = vrcp.f32 %v500_v19 }
 0x453   : > { %v1742_v20 = vpop.eup %1741 }
 0x454   : > { %v612_v37 = vpop.xlane.xlu2 %611 }
 0x45b   : > { %v525_v21 = vpop.f32.mrf.mxu2 }
 0x45c   : > { %v528_v22 = vmul.f32 %v1742_v20, %v525_v21  ;;  %v862_v20 = vld [vmem:[%s2304_s5 + $0x30] sm:$0xff] }
 0x45d   : > { %878 = vmatpush.msrb.mxu3 %v862_v20 }
 0x45e   : > { %1618 = vmatmul.msk.f32.vlgmr.msrb.gmra.mxu1 %vm400_vm5, %v528_v22 }
 0x45f   : > { %804 = vmatpush.msrb.mxu1 %v787_v56 }
 0x4a2   : > { %v696_v23 = vpop.xlane.xlu1 %695 }
 0x4a3   : > { %v697_v24 = vsub.f32 %v693_v16, %v696_v23  ;;  %v861_v23 = vld [vmem:[%s2304_s5 + $0x28] sm:$0xff] }
 0x4a4   : > { %879 = vmatpush.msrb.mxu3 %v861_v23 }
 0x4a5   : > { %v698_v25 = vmul.f32 1.442695, %v697_v24 }
 0x4a7   : > { %1743 = vpow2.f32 %v698_v25 }
 0x4ad   : > { %v1744_v26 = vpop.eup %1743 }
 0x4ae   : > { %1626 = vmatmul.msk.f32.vlgmr.msra.gmra.mxu0 %vm400_vm5, %v1744_v26  ;;  %v700_v27 = vsel %vm400_vm5, %v1744_v26, 0.0  ;;  %v860_v26 = vld [vmem:[%s2304_s5 + $0x20] sm:$0xff] }
 0x4af   : > { %701 = vadd.xlane.f32.xlu1 %v700_v27  ;;  %880 = vmatpush.msrb.mxu3 %v860_v26 }
 0x4ba   : > { %v615_v28 = vpop.permute.xlu1 %614 }
 0x4bb   : > { %635 = vmatpush.msra.mxu2 %v615_v28  ;;  %v859_v28 = vld [vmem:[%s2304_s5 + $0x18] sm:$0xff] }
 0x4bc   : > { %1622 = vmatmul.msk.f32.vlgmr.msra.gmra.mxu2 %vm400_vm5, %v1740_v11  ;;  %v788_v11 = vperm.slane %v1985_v34, 4  ;;  %881 = vmatpush.msrb.mxu3 %v859_v28  ;;  %v2126_v28 = vld [vmem:[%s2305_s6 + $0x8] sm:$0xff] }
 0x4bd   : > { %749 = vmatpush.msrb.mxu2 %v396_v29 }
 0x4db   : > { %v549_v41 = vpop.f32.mrf.mxu1 }
 0x4dc   : > { %v573_v42 = vadd.f32 %v572_v14, %v549_v41 }
 0x522   : > { %v702_v31 = vpop.xlane.xlu1 %701 }
 0x523   : > { %1745 = vrcp.f32 %v702_v31  ;;  %v858_v31 = vld [vmem:[%s2304_s5 + $0x10] sm:$0xff] }
 0x524   : > { %1747 = vrcp.f32 %v612_v37  ;;  %882 = vmatpush.msrb.mxu3 %v858_v31  ;;  %v856_v37 = vld [vmem:[%s2304_s5] sm:$0xff] }
 0x529   : > { %v1746_v32 = vpop.eup %1745 }
 0x52a   : > { %v1748_v38 = vpop.eup %1747 }
 0x52b   : > { %v727_v35 = vpop.f32.mrf.mxu0 }
 0x52c   : > { %v730_v36 = vmul.f32 %v1746_v32, %v727_v35  ;;  %v857_v35 = vld [vmem:[%s2304_s5 + $0x8] sm:$0xff] }
 0x52d   : > { %883 = vmatpush.msrb.mxu3 %v857_v35 }
 0x52e   : > { %1627 = vmatmul.msk.f32.vlgmr.msrb.gmra.mxu2 %vm400_vm5, %v730_v36 }
 0x52f   : > { %884 = vmatpush.msrb.mxu3 %v856_v37 }
 0x53f   : > { %v637_v39 = vpop.f32.mrf.mxu2 }
 0x540   : > { %v640_v40 = vmul.f32 %v1748_v38, %v637_v39 }
 0x542   : > { %1623 = vmatmul.msk.f32.vlgmr.msra.gmra.mxu1 %vm400_vm5, %v640_v40 }
 0x5b1   : > { %v751_v46 = vpop.f32.mrf.mxu2 }
 0x5bf   : > { %v661_v43 = vpop.f32.mrf.mxu1 }
 0x5c0   : > { %v664_v44 = vadd.f32 %v661_v43, %v573_v42 }
 0x5c2   : > { %v754_v47 = vadd.f32 %v751_v46, %v664_v44 }
 0x5c4   : > { %v756_v48 = vadd.f32 %v755_v45, %v754_v47 }
 0x5c6   : > { %v757_v49 = vadd.f32 %v756_v48, %v1978_v33  ;;  %v786_v33 = vld [vmem:[%s2303_s4 + $0x10] sm:$0xff] }
 0x5c7   : > { %805 = vmatpush.msrb.mxu1 %v786_v33 }
 0x5c8   : > { %v758_v50 = vsel %vm330_vm0, %v757_v49, 0.0 }
 0x5c9   : > { %759 = vadd.xlane.f32.xlu2 %v758_v50  ;;  %806 = vmatpush.msrb.mxu1 %v785_v57 }
 0x5cb   : > { %807 = vmatpush.msrb.mxu1 %v784_v58 }
 0x63c   : > { %v760_v51 = vpop.xlane.xlu2 %759 }
 0x63d   : > { %v761_v52 = vmul.f32 %v760_v51, %v1958_v8 }
 0x63f   : > { %v762_v53 = vsub.f32 %v757_v49, %v761_v52 }
 0x641   : > { %v763_v54 = vmul.f32 %v762_v53, %v762_v53 }
 0x643   : > { %v764_v55 = vsel %vm330_vm0, %v763_v54, 0.0 }
 0x644   : > { %765 = vadd.xlane.f32.xlu0 %v764_v55 }
 0x6b7   : > { %v766_v59 = vpop.xlane.xlu0 %765 }
 0x6b8   : > { %v767_v60 = vmul.f32 %v766_v59, %v1958_v8 }
 0x6ba   : > { %v768_v61 = vadd.f32 1e-12, %v767_v60 }
 0x6bc   : > { %1749 = vrsqrt.f32 %v768_v61  ;;  %vm775_vm7 = vweird.f32 %v768_v61 }
 0x6c2   : > { %v1750_v62 = vpop.eup %1749 }
 0x6c3   : > { %v770_v63 = vmul.f32 %v1750_v62, %v768_v61  ;;  %vm776_vm6 = vweird.f32 %v1750_v62 }
 0x6c4   : > { %vm777_vm8 = vmor %vm775_vm7, %vm776_vm6 }
 0x6c5   : > { %v771_v0 = vmul.f32 %v1750_v62, %v770_v63 }
 0x6c7   : > { %v772_v1 = vmul.f32 0.5, %v771_v0 }
 0x6c9   : > { %v773_v2 = vsub.f32 1.5, %v772_v1 }
 0x6cb   : > { %v774_v3 = vmul.f32 %v1750_v62, %v773_v2 }
 0x6cd   : > { %v778_v5 = vsel %vm777_vm8, %v1750_v62, %v774_v3  ;;  %v864_v62 = vperm.slane %v1985_v34, 5 }
 0x6ce   : > { %v779_v6 = vmul.f32 %v778_v5, %v762_v53 }
 0x6d0   : > { %v781_v9 = vmul.f32 %v780_v4, %v779_v6 }
 0x6d2   : > { %v2069_v10 = vadd.f32 %v782_v7, %v781_v9  ;;  %v1635_v9 = vld [vmem:[%s2301_s2 + $0x38] sm:$0xff] }
 0x6d3   : > { %939 = vmatpush.msrb.mxu0 %v1635_v9 }
 0x6d4   : > { %1628 = vmatmul.msk.f32.vlgmr.msrb.gmra.mxu1 %vm330_vm0, %v2069_v10 }
 0x751   : > { %v809_v12 = vpop.f32.mrf.mxu1 }
 0x752   : > { %v810_v13 = vadd.f32 %v809_v12, %v788_v11  ;;  %v1633_v11 = vld [vmem:[%s2301_s2 + $0x28] sm:$0xff]  ;;  %v1632_v12 = vld [vmem:[%s2301_s2 + $0x20] sm:$0xff] }
 0x754   : > { %v813_v14 = vmul.f32 0.70710677, %v810_v13  ;;  %v812_v59 = vmul.f32 0.5, %v810_v13 }
 0x756   : > { %v814_v15 = vmul.f32 %v813_v14, %v813_v14 }
 0x758   : > { %v815_v16 = vmin.f32 %v814_v15, 16.0 }
 0x75a   : > { %v816_v18 = vmul.f32 2.1237322e-06, %v815_v16  ;;  %v827_v19 = vmul.f32 3.8918573e-05, %v815_v16 }
 0x75c   : > { %v817_v21 = vadd.f32 0.00028619796, %v816_v18  ;;  %v828_v22 = vadd.f32 0.001143296, %v827_v19 }
 0x75e   : > { %v818_v24 = vmul.f32 %v817_v21, %v815_v16  ;;  %v829_v25 = vmul.f32 %v828_v22, %v815_v16  ;;  %v912_v22 = vperm.slane %v1985_v34, 6 }
 0x760   : > { %v830_v27 = vadd.f32 0.014752088, %v829_v25  ;;  %v819_v29 = vadd.f32 0.0036580483, %v818_v24  ;;  %v914_v25 = vperm.slane %v1985_v34, 7  ;;  %v1637_v34 = vld [vmem:[%s2302_s3 + $0x20] sm:$0xff] }
 0x761   : > { %1124 = vmatpush.msra.mxu3 %v1637_v34 }
 0x762   : > { %v831_v30 = vmul.f32 %v830_v27, %v815_v16  ;;  %v820_v36 = vmul.f32 %v819_v29, %v815_v16  ;;  %v923_v29 = vperm.slane %v2126_v28, 0 }
 0x764   : > { %v832_v32 = vadd.f32 0.112945676, %v831_v30  ;;  %v821_v40 = vadd.f32 0.05243302, %v820_v36 }
 0x766   : > { %v833_v38 = vmul.f32 %v832_v32, %v815_v16  ;;  %v822_v43 = vmul.f32 %v821_v40, %v815_v16 }
 0x768   : > { %v834_v39 = vadd.f32 0.4994258, %v833_v38  ;;  %v823_v44 = vadd.f32 0.18741608, %v822_v43 }
 0x76a   : > { %v835_v41 = vmul.f32 %v834_v39, %v815_v16  ;;  %v824_v46 = vmul.f32 %v823_v44, %v815_v16 }
 0x76c   : > { %v836_v42 = vadd.f32 1.0, %v835_v41  ;;  %v825_v50 = vadd.f32 1.1283791, %v824_v46 }
 0x76e   : > { %1751 = vrcp.f32 %v836_v42  ;;  %v848_v49 = vand.u32 2147483648, %v836_v42  ;;  %v846_v52 = vand.u32 2147483647, %v836_v42  ;;  %vm842_vm10 = vweird.f32 %v836_v42 }
 0x76f   : > { %v826_v55 = vmul.f32 %v825_v50, %v813_v14 }
 0x770   : > { %v849_v54 = vor.u32 1.1754944e-38, %v848_v49  ;;  %vm847_vm12 = vcmp.eq.f32.partialorder %v846_v52, 8.507059e+37 }
 0x774   : > { %v1752_v45 = vpop.eup %1751 }
 0x775   : > { %v838_v47 = vmul.f32 %v1752_v45, %v836_v42  ;;  %vm843_vm9 = vweird.f32 %v1752_v45 }
 0x776   : > { %vm844_vm11 = vmor %vm842_vm10, %vm843_vm9 }
 0x777   : > { %v839_v48 = vsub.f32 1.0, %v838_v47 }
 0x779   : > { %v840_v51 = vmul.f32 %v1752_v45, %v839_v48 }
 0x77b   : > { %v841_v53 = vadd.f32 %v1752_v45, %v840_v51 }
 0x77d   : > { %v845_v56 = vsel %vm844_vm11, %v1752_v45, %v841_v53 }
 0x77e   : > { %v850_v33 = vsel %vm847_vm12, %v849_v54, %v845_v56 }
 0x77f   : > { %v851_v57 = vmul.f32 %v850_v33, %v826_v55 }
 0x781   : > { %v1629_v58 = vclamps-f32 %v851_v57, 1.0 }
 0x783   : > { %v854_v60 = vadd.f32 1.0, %v1629_v58 }
 0x785   : > { %v855_v61 = vmul.f32 %v854_v60, %v812_v59 }
 0x787   : > { %1630 = vmatmul.msk.f32.vlgmr.msrb.gmra.mxu3 %vm865_vm13, %v855_v61 }
 0x80a   : > { %v886_v63 = vpop.f32.mrf.mxu3 }
 0x80b   : > { %v887_v0 = vadd.f32 %v886_v63, %v864_v62 }
 0x80d   : > { %v889_v1 = vadd.f32 %v887_v0, %v2069_v10  ;;  %v1634_v10 = vld [vmem:[%s2301_s2 + $0x30] sm:$0xff] }
 0x80e   : > { %940 = vmatpush.msrb.mxu0 %v1634_v10 }
 0x80f   : > { %v890_v2 = vsel %vm330_vm0, %v889_v1, 0.0 }
 0x810   : > { %891 = vadd.xlane.f32.xlu2 %v890_v2  ;;  %941 = vmatpush.msrb.mxu0 %v1633_v11 }
 0x812   : > { %942 = vmatpush.msrb.mxu0 %v1632_v12 }
 0x883   : > { %v892_v3 = vpop.xlane.xlu2 %891 }
 0x884   : > { %v893_v4 = vmul.f32 %v892_v3, %v1958_v8 }
 0x886   : > { %v894_v5 = vsub.f32 %v889_v1, %v893_v4 }
 0x888   : > { %v895_v6 = vmul.f32 %v894_v5, %v894_v5 }
 0x88a   : > { %v896_v7 = vsel %vm330_vm0, %v895_v6, 0.0 }
 0x88b   : > { %897 = vadd.xlane.f32.xlu2 %v896_v7 }
 0x8fe   : > { %v898_v13 = vpop.xlane.xlu2 %897 }
 0x8ff   : > { %v899_v14 = vmul.f32 %v898_v13, %v1958_v8 }
 0x901   : > { %v900_v15 = vadd.f32 1e-12, %v899_v14 }
 0x903   : > { %1753 = vrsqrt.f32 %v900_v15  ;;  %vm907_vm15 = vweird.f32 %v900_v15 }
 0x909   : > { %v1754_v16 = vpop.eup %1753 }
 0x90a   : > { %v902_v17 = vmul.f32 %v1754_v16, %v900_v15  ;;  %vm908_vm14 = vweird.f32 %v1754_v16 }
 0x90b   : > { %vm909_vm1 = vmor %vm907_vm15, %vm908_vm14 }
 0x90c   : > { %v903_v18 = vmul.f32 %v1754_v16, %v902_v17 }
 0x90e   : > { %v904_v19 = vmul.f32 0.5, %v903_v18  ;;  %v1638_v18 = vld [vmem:[%s2302_s3 + $0x28] sm:$0xff] }
 0x910   : > { %v905_v20 = vsub.f32 1.5, %v904_v19  ;;  %v1639_v19 = vld [vmem:[%s2302_s3 + $0x30] sm:$0xff] }
 0x912   : > { %v906_v21 = vmul.f32 %v1754_v16, %v905_v20  ;;  %v1640_v20 = vld [vmem:[%s2302_s3 + $0x38] sm:$0xff] }
 0x914   : > { %v910_v23 = vsel %vm909_vm1, %v1754_v16, %v906_v21 }
 0x915   : > { %v911_v24 = vmul.f32 %v910_v23, %v894_v5 }
 0x917   : > { %v913_v26 = vmul.f32 %v912_v22, %v911_v24 }
 0x919   : > { %v2119_v27 = vadd.f32 %v914_v25, %v913_v26 }
 0x91b   : > { %1636 = vmatmul.msk.f32.vlgmr.msrb.gmra.mxu0 %vm330_vm0, %v2119_v27 }
 0x998   : > { %v944_v30 = vpop.f32.mrf.mxu0 }
 0x999   : > { %v945_v31 = vadd.f32 %v944_v30, %v923_v29 }
 0x99b   : > { %953 = vrot.lane.b32.xlu2 %v945_v31, %s1844_s27  ;;  %s2318_s27 = smov 64  }
 0x9a3   : > { %1019 = vrot.lane.b32.xlu2 %v945_v31, %s1845_s28  ;;  %s2319_s28 = smov 104  }
 0x9ab   : > { %1221 = vrot.lane.b32.xlu2 %v945_v31, %s1851_s22  ;;  %s2321_s22 = smov 120  }
 0x9b3   : > { %1131 = vrot.lane.b32.xlu2 %v945_v31, %s1848_s16  ;;  %s2320_s16 = smov 112  }
 0x9f5   : > { %v954_v32 = vpop.permute.xlu2 %953 }
 0x9f6   : > { %1641 = vmatpush.xpose.msk.msra.mxu2 %vm400_vm5, %v954_v32 }
 0x9f9   : > { %1642 = vmatmul.msk.f32.vlgmr.msra.gmra.mxu2 %vm400_vm5, %v945_v31 }
 0x9fd   : > { %v1020_v35 = vpop.permute.xlu2 %1019 }
 0x9fe   : > { %1644 = vmatpush.xpose.msk.msra.mxu0 %vm400_vm5, %v1020_v35 }
 0xa05   : > { %v1222_v36 = vpop.permute.xlu2 %1221 }
 0xa06   : > { %1653 = vmatpush.xpose.msk.msrb.mxu3 %vm400_vm5, %v1222_v36 }
 0xa0d   : > { %v1132_v37 = vpop.permute.xlu2 %1131 }
 0xa0e   : > { %1649 = vmatpush.xpose.msk.msrb.mxu0 %vm400_vm5, %v1132_v37 }
 0xa7c   : > { %v976_v38 = vpop.f32.mrf.mxu2 }
 0xa7d   : > { %v979_v39 = vmul.f32 0.35355338, %v976_v38 }
 0xa7f   : > { %v980_v40 = vsel %vm400_vm5, %v979_v39, -inf }
 0xa80   : > { %981 = vmax.xlane.f32.xlu1 %v980_v40  ;;  %v1309_v40 = vperm.slane %v2126_v28, 1 }
 0xa99   : > { %990 = vrot.lane.b32.xlu1 %v945_v31, %s2318_s27  ;;  %s1541_s27 = scalar_lea.hbm %s2308_s9, %s1675_s29 }
 0xaa1   : > { %1219 = vrot.lane.b32.xlu1 %v945_v31, %s2319_s28  ;;  %s323_s28 = scalar_lea.vmem [#allocation2], %s1609_s26  ;;  %s1798_s26 = scalar_lea.hbm %s2308_s9, 16 }
 0xaa9   : > { %1129 = vrot.lane.b32.xlu1 %v945_v31, %s2320_s16  ;;  %s1543_s16 = sshll.u32 %s323_s28, 4  ;;  %s1544_s16 = int_to_ptr.vmem [resolvable:$true] %s1543_s16 }
 0xaf3   : > { %v982_v41 = vpop.xlane.xlu1 %981 }
 0xaf4   : > { %v983_v42 = vsub.f32 %v979_v39, %v982_v41 }
 0xaf6   : > { %v984_v43 = vmul.f32 1.442695, %v983_v42 }
 0xaf8   : > { %1755 = vpow2.f32 %v984_v43 }
 0xafe   : > { %v1756_v44 = vpop.eup %1755 }
 0xaff   : > { %v986_v45 = vsel %vm400_vm5, %v1756_v44, 0.0 }
 0xb00   : > { %987 = vadd.xlane.f32.xlu0 %v986_v45 }
 0xb0b   : > { %v991_v46 = vpop.permute.xlu1 %990 }
 0xb0c   : > { %1011 = vmatpush.msra.mxu1 %v991_v46 }
 0xb0d   : > { %1643 = vmatmul.msk.f32.vlgmr.msra.gmra.mxu1 %vm400_vm5, %v1756_v44 }
 0xb0e   : > { %1101 = vmatpush.msrb.mxu1 %v1638_v18 }
 0xb10   : > { %1213 = vmatpush.msra.mxu1 %v1639_v19 }
 0xb13   : > { %v1220_v48 = vpop.permute.xlu1 %1219 }
 0xb14   : > { %1017 = vrot.lane.b32.xlu0 %v945_v31, %s2321_s22  ;;  %s1545_s22 = sshll.u32 %s1541_s27, 4  ;;  %s1546_s22 = int_to_ptr.hbm [resolvable:$true] %s1545_s22 }
 0xb1b   : > { %v1130_v53 = vpop.permute.xlu1 %1129 }
 0xb73   : > { %v988_v47 = vpop.xlane.xlu0 %987 }
 0xb74   : > { %1757 = vrcp.f32 %v988_v47 }
 0xb7a   : > { %v1758_v50 = vpop.eup %1757 }
 0xb86   : > { %v1018_v49 = vpop.permute.xlu0 %1017 }
 0xb87   : > { %1645 = vmatmul.msk.f32.vlgmr.msra.gmra.mxu0 %vm400_vm5, %v1018_v49 }
 0xb8a   : > { %v1013_v51 = vpop.f32.mrf.mxu1 }
 0xb8b   : > { %v1016_v52 = vmul.f32 %v1758_v50, %v1013_v51  ;;  %v1660_v51 = vld [vmem:[%s2303_s4 + $0x38] sm:$0xff] }
 0xb8d   : > { %1648 = vmatmul.msk.f32.vlgmr.msra.gmra.mxu3 %vm400_vm5, %v1016_v52  ;;  %v1658_v52 = vld [vmem:[%s2303_s4 + $0x28] sm:$0xff] }
 0xb8f   : > { %1650 = vmatmul.msk.f32.vlgmr.msrb.gmra.mxu0 %vm400_vm5, %v1130_v53  ;;  %v1657_v53 = vld [vmem:[%s2303_s4 + $0x20] sm:$0xff] }
 0xb95   : > { %1654 = vmatmul.msk.f32.vlgmr.msrb.gmra.mxu3 %vm400_vm5, %v1220_v48 }
 0xc04   : > { %v1042_v54 = vpop.f32.mrf.mxu0 }
 0xc05   : > { %v1045_v55 = vmul.f32 0.35355338, %v1042_v54 }
 0xc07   : > { %v1046_v56 = vsel %vm400_vm5, %v1045_v55, -inf }
 0xc08   : > { %1047 = vmax.xlane.f32.xlu0 %v1046_v56 }
 0xc0c   : > { %v1154_v33 = vpop.f32.mrf.mxu0 }
 0xc0d   : > { %v1157_v57 = vmul.f32 0.35355338, %v1154_v33 }
 0xc0f   : > { %v1158_v58 = vsel %vm400_vm5, %v1157_v57, -inf }
 0xc10   : > { %v2154_v59 = vpop.f32.mrf.mxu3  ;;  %1159 = vmax.xlane.f32.xlu2 %v1158_v58 }
 0xc18   : > { %v1244_v60 = vpop.f32.mrf.mxu3 }
 0xc19   : > { %v1247_v61 = vmul.f32 0.35355338, %v1244_v60 }
 0xc1b   : > { %v1248_v62 = vsel %vm400_vm5, %v1247_v61, -inf }
 0xc1c   : > { %1056 = vrot.lane.b32.xlu0 %v945_v31, %s2322_s21  ;;  %1249 = vmax.xlane.f32.xlu1 %v1248_v62  ;;  %v1334_v62 = vperm.slane %v2126_v28, 2  ;;  %s1531_s21 = scalar_lea.sflag [#allocation3], %s321_s25 }
 0xc28   : > { %1168 = vrot.lane.b32.xlu2 %v945_v31, %s2323_s23  ;;  %s1792_s23 = sshra.s32 %s1546_s22, 4  ;;  %s1793_s23 = int_to_ptr.hbm [resolvable:$true] %s1792_s23 }
 0xc29   : > { %s1794_s13 = scalar_lea.hbm %s1793_s23, 8  ;;  %p1799_p0 = scmp.lt.s32.totalorder %s1793_s23, %s2308_s9 }
 0xc2a   : > { %p1795_p11 = scmp.ne.s32.totalorder %s1793_s23, %s1794_s13  ;;  %p1800_p1 = scmp.lt.s32.totalorder %s1798_s26, %s1794_s13 }
 0xc2c   : > { %p1796_p12 = pnand %p1795_p11, %p1942_p5  ;;  %p1801_p2 = por %p1800_p1, %p1799_p0 }
 0xc2e   : > { %p1797_p13 = pneg %p1796_p12 }
 0xc30   : > { %p1802_p3 = pnand %p1801_p2, %p1797_p13 }
 0xc35   : > { %1258 = vrot.lane.b32.xlu1 %v945_v31, %s2324_s24 }
 0xc7b   : > { %v1048_v63 = vpop.xlane.xlu0 %1047 }
 0xc7c   : > { %v1049_v0 = vsub.f32 %v1045_v55, %v1048_v63 }
 0xc7e   : > { %v1050_v1 = vmul.f32 1.442695, %v1049_v0 }
 0xc80   : > { %1759 = vpow2.f32 %v1050_v1  ;;  %v1336_v1 = vperm.slane %v2126_v28, 3 }
 0xc83   : > { %v1160_v2 = vpop.xlane.xlu2 %1159 }
 0xc84   : > { %v1161_v3 = vsub.f32 %v1157_v57, %v1160_v2 }
 0xc86   : > { %v1760_v4 = vpop.eup %1759  ;;  %v1162_v5 = vmul.f32 1.442695, %v1161_v3 }
 0xc87   : > { %v1052_v6 = vsel %vm400_vm5, %v1760_v4, 0.0 }
 0xc88   : > { %1761 = vpow2.f32 %v1162_v5  ;;  %1053 = vadd.xlane.f32.xlu0 %v1052_v6 }
 0xc8b   : > { %v1169_v12 = vpop.permute.xlu2 %1168 }
 0xc8e   : > { %v1762_v7 = vpop.eup %1761  ;;  %v1057_v9 = vpop.permute.xlu0 %1056 }
 0xc8f   : > { %1077 = vmatpush.msrb.mxu2 %v1057_v9  ;;  %v1250_v10 = vpop.xlane.xlu1 %1249  ;;  %v1164_v11 = vsel %vm400_vm5, %v1762_v7, 0.0 }
 0xc90   : > { %v1251_v13 = vsub.f32 %v1247_v61, %v1250_v10  ;;  %1646 = vmatmul.msk.f32.vlgmr.msrb.gmra.mxu2 %vm400_vm5, %v1760_v4  ;;  %1165 = vadd.xlane.f32.xlu1 %v1164_v11  ;;  %v1343_v4 = vperm.slane %v2126_v28, 4  ;;  %v1670_v11 = vld [vmem:[%s2304_s5 + $0x78] sm:$0xff] }
 0xc91   : > { %1189 = vmatpush.msra.mxu2 %v1169_v12  ;;  %1432 = vmatpush.msra.mxu3 %v1670_v11 }
 0xc92   : > { %v1252_v14 = vmul.f32 1.442695, %v1251_v13 }
 0xc93   : > { %1303 = vmatpush.msrb.mxu2 %v1640_v20  ;;  %v1667_v20 = vld [vmem:[%s2304_s5 + $0x60] sm:$0xff] }
 0xc94   : > { %1763 = vpow2.f32 %v1252_v14  ;;  %v1669_v14 = vld [vmem:[%s2304_s5 + $0x70] sm:$0xff] }
 0xc95   : > { %1433 = vmatpush.msra.mxu3 %v1669_v14 }
 0xc98   : > { %1651 = vmatmul.msk.f32.vlgmr.msra.gmra.mxu2 %vm400_vm5, %v1762_v7 }
 0xc9a   : > { %v1764_v15 = vpop.eup %1763 }
 0xc9b   : > { %v1254_v16 = vsel %vm400_vm5, %v1764_v15, 0.0 }
 0xc9c   : > { %1255 = vadd.xlane.f32.xlu2 %v1254_v16 }
 0xca7   : > { %v1259_v17 = vpop.permute.xlu1 %1258 }
 0xca8   : > { %1279 = vmatpush.msra.mxu0 %v1259_v17  ;;  %v1668_v17 = vld [vmem:[%s2304_s5 + $0x68] sm:$0xff] }
 0xca9   : > { %1655 = vmatmul.msk.f32.vlgmr.msra.gmra.mxu0 %vm400_vm5, %v1764_v15  ;;  %1434 = vmatpush.msra.mxu3 %v1668_v17  ;;  %v1467_v17 = vperm.slane %v2126_v28, 6 }
 0xcab   : > { %1435 = vmatpush.msra.mxu3 %v1667_v20  ;;  %v1469_v20 = vperm.slane %v2126_v28, 7 }
 0xcfb   : > { %v1054_v21 = vpop.xlane.xlu0 %1053 }
 0xcfc   : > { %1765 = vrcp.f32 %v1054_v21 }
 0xd02   : > { %v1766_v23 = vpop.eup %1765 }
 0xd03   : > { %v1166_v22 = vpop.xlane.xlu1 %1165 }
 0xd04   : > { %1767 = vrcp.f32 %v1166_v22  ;;  %v1666_v22 = vld [vmem:[%s2304_s5 + $0x58] sm:$0xff] }
 0xd05   : > { %1436 = vmatpush.msra.mxu3 %v1666_v22  ;;  %v1502_v22 = vld [vmem:[%s2307_s8 + $0x10] sm:$0xff] }
 0xd0a   : > { %v1768_v26 = vpop.eup %1767 }
 0xd0f   : > { %v1256_v31 = vpop.xlane.xlu2 %1255 }
 0xd10   : > { %1769 = vrcp.f32 %v1256_v31  ;;  %v1663_v31 = vld [vmem:[%s2304_s5 + $0x40] sm:$0xff] }
 0xd13   : > { %v1079_v24 = vpop.f32.mrf.mxu2 }
 0xd14   : > { %v1082_v25 = vmul.f32 %v1766_v23, %v1079_v24 }
 0xd16   : > { %1647 = vmatmul.msk.f32.vlgmr.msrb.gmra.mxu1 %vm400_vm5, %v1082_v25  ;;  %v1770_v34 = vpop.eup %1769  ;;  %v1665_v25 = vld [vmem:[%s2304_s5 + $0x50] sm:$0xff] }
 0xd17   : > { %1359 = vmatpush.msrb.mxu1 %v1660_v51  ;;  %1437 = vmatpush.msra.mxu3 %v1665_v25 }
 0xd1b   : > { %v1191_v29 = vpop.f32.mrf.mxu2 }
 0xd1c   : > { %v1194_v30 = vmul.f32 %v1768_v26, %v1191_v29  ;;  %v1664_v29 = vld [vmem:[%s2304_s5 + $0x48] sm:$0xff] }
 0xd1d   : > { %1438 = vmatpush.msra.mxu3 %v1664_v29 }
 0xd1e   : > { %1652 = vmatmul.msk.f32.vlgmr.msra.gmra.mxu1 %vm400_vm5, %v1194_v30 }
 0xd1f   : > { %1439 = vmatpush.msra.mxu3 %v1663_v31 }
 0xd26   : > { %v1281_v32 = vpop.f32.mrf.mxu0 }
 0xd27   : > { %v1284_v35 = vmul.f32 %v1770_v34, %v1281_v32 }
 0xd29   : > { %1656 = vmatmul.msk.f32.vlgmr.msrb.gmra.mxu2 %vm400_vm5, %v1284_v35 }
 0xd93   : > { %v1103_v36 = vpop.f32.mrf.mxu1 }
 0xd94   : > { %v1127_v38 = vadd.f32 %v2154_v59, %v1103_v36 }
 0xd9b   : > { %v1215_v37 = vpop.f32.mrf.mxu1 }
 0xd9c   : > { %v1218_v39 = vadd.f32 %v1215_v37, %v1127_v38 }
 0xdac   : > { %v1305_v41 = vpop.f32.mrf.mxu2 }
 0xdad   : > { %v1308_v42 = vadd.f32 %v1305_v41, %v1218_v39 }
 0xdaf   : > { %v1310_v43 = vadd.f32 %v1309_v40, %v1308_v42 }
 0xdb1   : > { %v1311_v44 = vadd.f32 %v1310_v43, %v2119_v27  ;;  %v1659_v27 = vld [vmem:[%s2303_s4 + $0x30] sm:$0xff] }
 0xdb2   : > { %1360 = vmatpush.msrb.mxu1 %v1659_v27 }
 0xdb3   : > { %v1312_v45 = vsel %vm330_vm0, %v1311_v44, 0.0 }
 0xdb4   : > { %1313 = vadd.xlane.f32.xlu0 %v1312_v45  ;;  %1361 = vmatpush.msrb.mxu1 %v1658_v52 }
 0xdb6   : > { %1362 = vmatpush.msrb.mxu1 %v1657_v53 }
 0xe27   : > { %v1314_v46 = vpop.xlane.xlu0 %1313 }
 0xe28   : > { %v1315_v47 = vmul.f32 %v1314_v46, %v1958_v8 }
 0xe2a   : > { %v1316_v48 = vsub.f32 %v1311_v44, %v1315_v47 }
 0xe2c   : > { %v1317_v49 = vmul.f32 %v1316_v48, %v1316_v48 }
 0xe2e   : > { %v1318_v50 = vsel %vm330_vm0, %v1317_v49, 0.0 }
 0xe2f   : > { %1319 = vadd.xlane.f32.xlu2 %v1318_v50 }
 0xea2   : > { %v1320_v54 = vpop.xlane.xlu2 %1319 }
 0xea3   : > { %v1321_v55 = vmul.f32 %v1320_v54, %v1958_v8 }
 0xea5   : > { %v1322_v56 = vadd.f32 1e-12, %v1321_v55 }
 0xea7   : > { %1771 = vrsqrt.f32 %v1322_v56  ;;  %vm1329_vm3 = vweird.f32 %v1322_v56 }
 0xead   : > { %v1772_v33 = vpop.eup %1771 }
 0xeae   : > { %v1324_v57 = vmul.f32 %v1772_v33, %v1322_v56  ;;  %vm1330_vm2 = vweird.f32 %v1772_v33 }
 0xeaf   : > { %vm1331_vm4 = vmor %vm1329_vm3, %vm1330_vm2 }
 0xeb0   : > { %v1325_v58 = vmul.f32 %v1772_v33, %v1324_v57 }
 0xeb2   : > { %v1326_v59 = vmul.f32 0.5, %v1325_v58 }
 0xeb4   : > { %v1327_v60 = vsub.f32 1.5, %v1326_v59 }
 0xeb6   : > { %v1328_v61 = vmul.f32 %v1772_v33, %v1327_v60 }
 0xeb8   : > { %v1332_v63 = vsel %vm1331_vm4, %v1772_v33, %v1328_v61  ;;  %v1420_v33 = vperm.slane %v2126_v28, 5  ;;  %v1500_v28 = vld [vmem:[%s2307_s8] sm:$0xff] }
 0xeb9   : > { %v1333_v0 = vmul.f32 %v1332_v63, %v1316_v48 }
 0xebb   : > { %v1335_v2 = vmul.f32 %v1334_v62, %v1333_v0 }
 0xebd   : > { %v2199_v3 = vadd.f32 %v1336_v1, %v1335_v2  ;;  %v1474_v2 = vld [vmem:[%s2306_s7 + $0x18] sm:$0xff] }
 0xebe   : > { %1491 = vmatpush.msrb.mxu0 %v1474_v2 }
 0xebf   : > { %1661 = vmatmul.msk.f32.vlgmr.msrb.gmra.mxu1 %vm330_vm0, %v2199_v3 }
 0xf3c   : > { %v1364_v5 = vpop.f32.mrf.mxu1 }
 0xf3d   : > { %v1365_v6 = vadd.f32 %v1364_v5, %v1343_v4  ;;  %v1472_v4 = vld [vmem:[%s2306_s7 + $0x8] sm:$0xff]  ;;  %v1471_v5 = vld [vmem:[%s2306_s7] sm:$0xff] }
 0xf3f   : > { %v1368_v7 = vmul.f32 0.70710677, %v1365_v6  ;;  %v1367_v54 = vmul.f32 0.5, %v1365_v6  ;;  %v1503_v6 = vld [vmem:[%s2307_s8 + $0x18] sm:$0xff] }
 0xf40   : > { %1520 = vmatpush.msra.mxu2 %v1503_v6 }
 0xf41   : > { %v1369_v9 = vmul.f32 %v1368_v7, %v1368_v7 }
 0xf42   : > { %1521 = vmatpush.msra.mxu2 %v1502_v22 }
 0xf43   : > { %v1370_v10 = vmin.f32 %v1369_v9, 16.0 }
 0xf45   : > { %v1371_v12 = vmul.f32 2.1237322e-06, %v1370_v10  ;;  %v1382_v13 = vmul.f32 3.8918573e-05, %v1370_v10 }
 0xf47   : > { %v1372_v15 = vadd.f32 0.00028619796, %v1371_v12  ;;  %v1383_v16 = vadd.f32 0.001143296, %v1382_v13 }
 0xf49   : > { %v1373_v18 = vmul.f32 %v1372_v15, %v1370_v10  ;;  %v1384_v19 = vmul.f32 %v1383_v16, %v1370_v10 }
 0xf4b   : > { %v1385_v21 = vadd.f32 0.014752088, %v1384_v19  ;;  %v1374_v23 = vadd.f32 0.0036580483, %v1373_v18 }
 0xf4d   : > { %v1386_v24 = vmul.f32 %v1385_v21, %v1370_v10  ;;  %v1375_v30 = vmul.f32 %v1374_v23, %v1370_v10  ;;  %v1501_v23 = vld [vmem:[%s2307_s8 + $0x8] sm:$0xff] }
 0xf4e   : > { %1522 = vmatpush.msra.mxu2 %v1501_v23 }
 0xf4f   : > { %v1387_v26 = vadd.f32 0.112945676, %v1386_v24  ;;  %v1376_v35 = vadd.f32 0.05243302, %v1375_v30  ;;  %v1777_v24 = vld [vmem:[%s2300_s1] sm:$0xff] }
 0xf50   : > { %1523 = vmatpush.msra.mxu2 %v1500_v28  ;;  %v1475_v25 = vperm.slane %v1777_v24, 2  ;;  %v1504_v31 = vperm.slane %v1777_v24, 3 }
 0xf51   : > { %v1388_v34 = vmul.f32 %v1387_v26, %v1370_v10  ;;  %v1377_v38 = vmul.f32 %v1376_v35, %v1370_v10 }
 0xf53   : > { %v1389_v32 = vadd.f32 0.4994258, %v1388_v34  ;;  %v1378_v39 = vadd.f32 0.18741608, %v1377_v38 }
 0xf55   : > { %v1390_v36 = vmul.f32 %v1389_v32, %v1370_v10  ;;  %v1379_v41 = vmul.f32 %v1378_v39, %v1370_v10 }
 0xf57   : > { %v1391_v37 = vadd.f32 1.0, %v1390_v36  ;;  %v1380_v45 = vadd.f32 1.1283791, %v1379_v41 }
 0xf59   : > { %1773 = vrcp.f32 %v1391_v37  ;;  %v1403_v44 = vand.u32 2147483648, %v1391_v37  ;;  %v1401_v47 = vand.u32 2147483647, %v1391_v37  ;;  %vm1397_vm6 = vweird.f32 %v1391_v37 }
 0xf5a   : > { %v1381_v50 = vmul.f32 %v1380_v45, %v1368_v7 }
 0xf5b   : > { %v1404_v49 = vor.u32 1.1754944e-38, %v1403_v44  ;;  %vm1402_vm8 = vcmp.eq.f32.partialorder %v1401_v47, 8.507059e+37 }
 0xf5f   : > { %v1774_v40 = vpop.eup %1773 }
 0xf60   : > { %v1393_v42 = vmul.f32 %v1774_v40, %v1391_v37  ;;  %vm1398_vm5 = vweird.f32 %v1774_v40 }
 0xf61   : > { %vm1399_vm7 = vmor %vm1397_vm6, %vm1398_vm5 }
 0xf62   : > { %v1394_v43 = vsub.f32 1.0, %v1393_v42 }
 0xf64   : > { %v1395_v46 = vmul.f32 %v1774_v40, %v1394_v43 }
 0xf66   : > { %v1396_v48 = vadd.f32 %v1774_v40, %v1395_v46 }
 0xf68   : > { %v1400_v51 = vsel %vm1399_vm7, %v1774_v40, %v1396_v48 }
 0xf69   : > { %v1405_v27 = vsel %vm1402_vm8, %v1404_v49, %v1400_v51 }
 0xf6a   : > { %v1406_v52 = vmul.f32 %v1405_v27, %v1381_v50 }
 0xf6c   : > { %v1662_v53 = vclamps-f32 %v1406_v52, 1.0 }
 0xf6e   : > { %v1409_v55 = vadd.f32 1.0, %v1662_v53 }
 0xf70   : > { %v1410_v56 = vmul.f32 %v1409_v55, %v1367_v54 }
 0xf72   : > { %1671 = vmatmul.msk.f32.vlgmr.msra.gmra.mxu3 %vm865_vm13, %v1410_v56 }
 0xff5   : > { %v1441_v57 = vpop.f32.mrf.mxu3 }
 0xff6   : > { %v1442_v58 = vadd.f32 %v1441_v57, %v1420_v33 }
 0xff8   : > { %v1444_v59 = vadd.f32 %v1442_v58, %v2199_v3  ;;  %v1473_v3 = vld [vmem:[%s2306_s7 + $0x10] sm:$0xff] }
 0xff9   : > { %1492 = vmatpush.msrb.mxu0 %v1473_v3 }
 0xffa   : > { %v1445_v60 = vsel %vm330_vm0, %v1444_v59, 0.0 }
 0xffb   : > { %1446 = vadd.xlane.f32.xlu0 %v1445_v60  ;;  %1493 = vmatpush.msrb.mxu0 %v1472_v4 }
 0xffd   : > { %1494 = vmatpush.msrb.mxu0 %v1471_v5 }
0x106e   : > { %v1447_v61 = vpop.xlane.xlu0 %1446 }
0x106f   : > { %v1448_v62 = vmul.f32 %v1447_v61, %v1958_v8 }
0x1071   : > { %v1449_v63 = vsub.f32 %v1444_v59, %v1448_v62 }
0x1073   : > { %v1450_v0 = vmul.f32 %v1449_v63, %v1449_v63 }
0x1075   : > { %v1451_v1 = vsel %vm330_vm0, %v1450_v0, 0.0 }
0x1076   : > { %1452 = vadd.xlane.f32.xlu1 %v1451_v1 }
0x10e9   : > { %v1453_v7 = vpop.xlane.xlu1 %1452 }
0x10ea   : > { %v1454_v9 = vmul.f32 %v1453_v7, %v1958_v8 }
0x10ec   : > { %v1455_v10 = vadd.f32 1e-12, %v1454_v9 }
0x10ee   : > { %1775 = vrsqrt.f32 %v1455_v10  ;;  %vm1462_vm10 = vweird.f32 %v1455_v10 }
0x10f4   : > { %v1776_v11 = vpop.eup %1775 }
0x10f5   : > { %v1457_v12 = vmul.f32 %v1776_v11, %v1455_v10  ;;  %vm1463_vm9 = vweird.f32 %v1776_v11 }
0x10f6   : > { %vm1464_vm11 = vmor %vm1462_vm10, %vm1463_vm9 }
0x10f7   : > { %v1458_v13 = vmul.f32 %v1776_v11, %v1457_v12 }
0x10f9   : > { %v1459_v14 = vmul.f32 0.5, %v1458_v13 }
0x10fb   : > { %v1460_v15 = vsub.f32 1.5, %v1459_v14 }
0x10fd   : > { %v1461_v16 = vmul.f32 %v1776_v11, %v1460_v15 }
0x10ff   : > { %v1465_v18 = vsel %vm1464_vm11, %v1776_v11, %v1461_v16 }
0x1100   : > { %v1466_v19 = vmul.f32 %v1465_v18, %v1449_v63 }
0x1102   : > { %v1468_v21 = vmul.f32 %v1467_v17, %v1466_v19 }
0x1104   : > { %v1470_v8 = vadd.f32 %v1469_v20, %v1468_v21 }
0x1106   : > { %1672 = vmatmul.msk.f32.vlgmr.msrb.gmra.mxu0 %vm330_vm0, %v1470_v8 }
0x1183   : > { %v1496_v26 = vpop.f32.mrf.mxu0 }
0x1184   : > { %v1497_v29 = vadd.f32 %v1496_v26, %v1475_v25 }
0x1186   : > { %v1499_v30 = vmax.f32 %v1497_v29, 0.0 }
0x1188   : > { %1673 = vmatmul.msk.f32.vlgmr.msra.gmra.mxu2 %vm330_vm0, %v1499_v30 }
0x120b   : > { %v1525_v34 = vpop.f32.mrf.mxu2 }
0x120c   : > { %v1526_v32 = vadd.f32 %v1525_v34, %v1504_v31 }
0x120e   : > { %v1528_v35 = vmax.f32 %v1526_v32, 0.0 }
0x1210   : > { %1529 = vst.msk [vmem:[%s323_s28] sm:$0xff] %vm330_vm0, %v1528_v35 }
0x1211   : > { %1805 = shalt.err (!%p1802_p3)
}
0x1212   : > { %1678 = dma.vmem_to_hbm [thread:$0]  (%p1942_p5), %s1544_s16, 128, %s1546_s22, %s1531_s21  }
0x1213 PF: > { %p1684_p4 = scmp.ge.s32.totalorder %s1840_s12, 2  ;;  %s1557_s25 = sand.u32 1, %s1828_s30  }
0x1214   : > { %s1558_s27 = scalar_lea.sflag [#allocation3], %s1557_s25 }
0x1215   : > { %p1681_p7 = pnand %p1684_p4, %p1946_p6 }
0x1217   : > { %p1682_p8 = pneg %p1681_p7 }
0x1219   : > { %1823 = dma.done.wait (%p1682_p8), %s1558_s27, 128  }
0x121a   : > { %1825 = vsyncadd (%p1682_p8), %s1558_s27, 4294967168  ;;  %p19_p9 = scmp.ge.s32.totalorder %s1929_s15, 4   ;;  %s2325_s30 = smov %s1832_s10 }
0x121b   : > { %s2326_s10 = smov %s1836_s11  ;;  %s2327_s11 = smov %s1940_s18 }
0x121c   : > { %s2328_s12 = smov %s1929_s15  ;;  %21 = sbr.rel (!%p19_p9) target bundleno = 3 (0x3), region = 96 }
0x1221   :  { %1564 = vsyncpa [#allocation3], 1 }
0x1222   :  { %1566 = vsyncpa [#allocation3 + $0x1], 1 }

</bundles_post_ra>
